<compile_context>
chip_gen: v5e
topology: v5e:2x2
jax: 0.10.0
libtpu: 0.0.40
codegen_flags: <defaults>
</compile_context>

<pallas_src>
import math
import functools

import jax
import jax.numpy as jnp
from jax import lax
from jax.experimental import pallas as pl
from jax.experimental.pallas import tpu as pltpu


def _gelu(x):
    # tanh-approx GELU, same formula as the PyTorch reference (kept in f32)
    return 0.5 * x * (1.0 + jnp.tanh(math.sqrt(2.0 / math.pi) * (x + 0.044715 * x ** 3)))


def block_kernel(
    x_ref,            # (1, tq, C) f32   current query tile
    g1_ref, b1_ref,   # (1, C) f32       ln_1
    wq_ref, bq_ref,   # (C, C) bf16, (1, C) f32        c_attn query part (scale pre-folded)
    wkv_ref, bkv_ref, # (C, 2C) bf16, (1, 2C) f32      c_attn key/value part
    wap_ref, bap_ref, # (C, C) bf16, (1, C) f32        attn c_proj
    g2_ref, b2_ref,   # (1, C) f32       ln_2
    wfc_ref, bfc_ref, # (C, 4C) bf16, (1, 4C) f32      mlp c_fc
    wmp_ref, bmp_ref, # (4C, C) bf16, (1, C) f32       mlp c_proj
    out_ref,          # (1, tq, C) f32
    present_ref,      # (2, 1, tq, C) bf16   lane-dense K/V slabs for this tile
    k_scr, v_scr,     # (T, C) bf16 VMEM scratch, persistent across the query-tile axis
    *, n_head, eps, q_tile,
):
    qt = pl.program_id(1)
    T, C = k_scr.shape
    hd = C // n_head
    tq = q_tile
    row0 = pl.multiple_of(qt * tq, tq)

    def layer_norm(h, g, b):
        # TF-style LayerNorm (epsilon inside the square root) — matches the PyTorch reference.
        u = jnp.mean(h, axis=-1, keepdims=True)
        s = jnp.mean((h - u) ** 2, axis=-1, keepdims=True)
        return g * ((h - u) * lax.rsqrt(s + eps)) + b

    # ---- ln_1 for this tile ------------------------------------------------------------------
    x_t = x_ref[0]                                                    # (tq, C) f32
    h_t = layer_norm(x_t, g1_ref[0], b1_ref[0])
    h_b = h_t.astype(jnp.bfloat16)

    # ---- incremental K/V: this tile only (causality => query tile qt never needs tiles > qt) --
    kv = jnp.dot(h_b, wkv_ref[...], preferred_element_type=jnp.float32) + bkv_ref[0]   # (tq, 2C)
    k_b = kv[:, :C].astype(jnp.bfloat16)
    v_b = kv[:, C:].astype(jnp.bfloat16)
    k_scr[pl.ds(row0, tq), :] = k_b
    v_scr[pl.ds(row0, tq), :] = v_b
    present_ref[0, 0] = k_b                                           # bf16 KV-cache writeback
    present_ref[1, 0] = v_b

    # ---- query projection (1/sqrt(hd) scale, if requested, is folded into wq/bq in wrapper) ---
    q_t = jnp.dot(h_b, wq_ref[...], preferred_element_type=jnp.float32) + bq_ref[0]    # (tq, C)
    q3 = q_t.astype(jnp.bfloat16).reshape(tq, n_head, hd)

    # ---- causal flash-style attention over key tiles 0..qt (online softmax) -------------------
    rows = row0 + lax.broadcasted_iota(jnp.int32, (tq, tq), 0)
    cols_base = lax.broadcasted_iota(jnp.int32, (tq, tq), 1)

    def kv_step(kvt, carry):
        m_prev, l_prev, acc_prev = carry
        col0 = pl.multiple_of(kvt * tq, tq)
        k3 = k_scr[pl.ds(col0, tq), :].reshape(tq, n_head, hd)        # bf16
        v3 = v_scr[pl.ds(col0, tq), :].reshape(tq, n_head, hd)        # bf16
        s = jnp.einsum("tnd,snd->nts", q3, k3,
                       preferred_element_type=jnp.float32)            # (nh, tq, tq) f32
        mask = (col0 + cols_base) <= rows
        s = jnp.where(mask[None, :, :], s, jnp.float32(-1e10))
        m_new = jnp.maximum(m_prev, jnp.max(s, axis=-1, keepdims=True))
        alpha = jnp.exp(m_prev - m_new)
        p = jnp.exp(s - m_new)
        l_new = alpha * l_prev + jnp.sum(p, axis=-1, keepdims=True)
        pv = jnp.einsum("nts,snd->ntd", p.astype(jnp.bfloat16), v3,
                        preferred_element_type=jnp.float32)           # (nh, tq, hd)
        acc_new = alpha * acc_prev + pv
        return m_new, l_new, acc_new

    m0 = jnp.full((n_head, tq, 1), -1e30, jnp.float32)
    l0 = jnp.zeros((n_head, tq, 1), jnp.float32)
    acc0 = jnp.zeros((n_head, tq, hd), jnp.float32)
    _, l_f, acc_f = lax.fori_loop(0, qt + 1, kv_step, (m0, l0, acc0))

    a = acc_f * pl.reciprocal(l_f, approx=True)                       # (nh, tq, hd)
    a = a.transpose(1, 0, 2).reshape(tq, C)                           # merge heads -> (tq, C)
    # TODO(synk): if the Mosaic dump shows per-step relayouts around the head split/merge,
    # keep k_scr/v_scr in head-split layout written once per tile instead.

    a = jnp.dot(a.astype(jnp.bfloat16), wap_ref[...],
                preferred_element_type=jnp.float32) + bap_ref[0]      # attn c_proj

    # ---- residual 1 + ln_2 + MLP + residual 2 --------------------------------------------------
    x1 = x_t + a
    h2 = layer_norm(x1, g2_ref[0], b2_ref[0])
    hfc = jnp.dot(h2.astype(jnp.bfloat16), wfc_ref[...],
                  preferred_element_type=jnp.float32) + bfc_ref[0]
    hfc = _gelu(hfc)
    # TODO(synk): for C >= ~1280 on v7x, stream wfc/wmp over a K-tile axis (pltpu.emit_pipeline).
    m_out = jnp.dot(hfc.astype(jnp.bfloat16), wmp_ref[...],
                    preferred_element_type=jnp.float32) + bmp_ref[0]

    out_ref[0] = x1 + m_out


def block_forward(x, params, *, n_head, eps=1e-5, scale=False, q_tile=None):
    """x: (B, T, C) float32. Returns (out (B,T,C) f32, present (2,B,n_head,T,hd) f32)."""
    B, T, C = x.shape
    assert C % n_head == 0
    hd = C // n_head

    (g1, b1, w_attn, b_attn, w_ap, b_ap, g2, b2, w_fc, b_fc, w_mp, b_mp) = params

    # split c_attn into query / key-value parts; fold the 1/sqrt(hd) attention scale into the
    # query projection (avoids scaling the (nh, tq, tk) score tensor); pre-cast weights to bf16.
    w_q = w_attn[:, :C]
    b_q = b_attn[:, :C]
    if scale:
        q_scale = 1.0 / math.sqrt(hd)
        w_q = w_q * q_scale
        b_q = b_q * q_scale
    w_q = w_q.astype(jnp.bfloat16)
    w_kv = w_attn[:, C:].astype(jnp.bfloat16)
    b_kv = b_attn[:, C:]
    w_ap_b = w_ap.astype(jnp.bfloat16)
    w_fc_b = w_fc.astype(jnp.bfloat16)
    w_mp_b = w_mp.astype(jnp.bfloat16)

    # VMEM budget: stay well under physical capacity (64 MiB/TC on v7x, 128 MiB on v5e/v6e).
    try:
        vmem_cap = pltpu.get_tpu_info().vmem_capacity_bytes
    except Exception:
        vmem_cap = 64 * 1024 * 1024
    vmem_limit = min(int(vmem_cap * 0.85), 110 * 1024 * 1024)

    if q_tile is None:
        if T <= 256:
            q_tile = T
        elif T % 512 == 0 and vmem_cap >= 96 * 1024 * 1024:
            q_tile = 512      # 128-MiB-VMEM chips (v5e/v6e): bigger tiles amortize step overhead
        else:
            q_tile = 256      # v7x 64-MiB budget
    assert T % q_tile == 0, "T must be divisible by the query tile"
    nqt = T // q_tile

    # constant-index weight/bias blocks: single-buffered (index never changes, so the default
    # double-buffering buys zero overlap and only doubles VMEM residency).
    def const_spec(shape):
        return pl.BlockSpec(shape, lambda b, qt: tuple(0 for _ in shape),
                            pipeline_mode=pl.Buffered(1))

    kernel = functools.partial(block_kernel, n_head=n_head, eps=eps, q_tile=q_tile)

    out_shapes = (
        jax.ShapeDtypeStruct((B, T, C), jnp.float32),        # block output
        jax.ShapeDtypeStruct((2, B, T, C), jnp.bfloat16),    # lane-dense bf16 present (K/V slabs)
    )

    out, present_raw = pl.pallas_call(
        kernel,
        out_shape=out_shapes,
        grid_spec=pltpu.PrefetchScalarGridSpec(
            num_scalar_prefetch=0,
            grid=(B, nqt),
            in_specs=[
                pl.BlockSpec((1, q_tile, C), lambda b, qt: (b, qt, 0)),   # x, per query tile
                const_spec((1, C)), const_spec((1, C)),                   # ln_1 gamma/beta
                const_spec((C, C)), const_spec((1, C)),                   # c_attn (query)
                const_spec((C, 2 * C)), const_spec((1, 2 * C)),           # c_attn (key/value)
                const_spec((C, C)), const_spec((1, C)),                   # attn c_proj
                const_spec((1, C)), const_spec((1, C)),                   # ln_2 gamma/beta
                const_spec((C, 4 * C)), const_spec((1, 4 * C)),           # mlp c_fc
                const_spec((4 * C, C)), const_spec((1, C)),               # mlp c_proj
            ],
            out_specs=[
                pl.BlockSpec((1, q_tile, C), lambda b, qt: (b, qt, 0)),
                pl.BlockSpec((2, 1, q_tile, C), lambda b, qt: (0, b, qt, 0)),
            ],
            scratch_shapes=[
                pltpu.VMEM((T, C), jnp.bfloat16),   # K for the sequence so far (bf16)
                pltpu.VMEM((T, C), jnp.bfloat16),   # V for the sequence so far (bf16)
            ],
        ),
        compiler_params=pltpu.CompilerParams(
            dimension_semantics=("parallel", "arbitrary"),
            vmem_limit_bytes=vmem_limit,
        ),
    )(x, g1, b1, w_q, b_q, w_kv, b_kv, w_ap_b, b_ap, g2, b2, w_fc_b, b_fc, w_mp_b, b_mp)

    # free layout plumbing in the wrapper: (2,B,T,C) bf16 -> (2,B,n_head,T,hd) f32
    present = (present_raw.astype(jnp.float32)
               .reshape(2, B, T, n_head, hd).transpose(0, 1, 3, 2, 4))
    return out, present


# ---------------- pure-JAX reference (for verification) ----------------
def block_reference(x, params, *, n_head, eps=1e-5, scale=False):
    (g1, b1, w_attn, b_attn, w_ap, b_ap, g2, b2, w_fc, b_fc, w_mp, b_mp) = params
    B, T, C = x.shape
    hd = C // n_head

    def ln(h, g, b):
        u = jnp.mean(h, axis=-1, keepdims=True)
        s = jnp.mean((h - u) ** 2, axis=-1, keepdims=True)
        return g[0] * ((h - u) / jnp.sqrt(s + eps)) + b[0]

    h = ln(x, g1, b1)
    qkv = h @ w_attn + b_attn[0]
    q, k, v = jnp.split(qkv, 3, axis=-1)

    def split_heads(t):  # (B,T,C) -> (B,nh,T,hd)
        return t.reshape(B, T, n_head, hd).transpose(0, 2, 1, 3)

    qh, kh, vh = split_heads(q), split_heads(k), split_heads(v)
    present = jnp.stack([kh, vh])                     # (2,B,nh,T,hd)

    w = jnp.einsum("bhqd,bhkd->bhqk", qh, kh)
    if scale:
        w = w / math.sqrt(hd)
    mask = jnp.tril(jnp.ones((T, T), jnp.float32))[None, None]
    w = w * mask - 1e10 * (1.0 - mask)
    p = jax.nn.softmax(w, axis=-1)
    a = jnp.einsum("bhqk,bhkd->bhqd", p, vh).transpose(0, 2, 1, 3).reshape(B, T, C)
    a = a @ w_ap + b_ap[0]

    x1 = x + a
    h2 = ln(x1, g2, b2)
    m = _gelu(h2 @ w_fc + b_fc[0]) @ w_mp + b_mp[0]
    return x1 + m, present


if __name__ == "__main__":
    B, T, C, n_head = 2, 8, 32, 4   # n_ctx == T
    key = jax.random.PRNGKey(0)
    keys = jax.random.split(key, 6)

    x = jax.random.normal(keys[0], (B, T, C), jnp.float32)

    # deterministic parameter init (Conv1D: normal std=0.02, bias zeros; LN: ones/zeros)
    g1 = jnp.ones((1, C), jnp.float32)
    b1 = jnp.zeros((1, C), jnp.float32)
    w_attn = 0.02 * jax.random.normal(keys[1], (C, 3 * C), jnp.float32)
    b_attn = jnp.zeros((1, 3 * C), jnp.float32)
    w_ap = 0.02 * jax.random.normal(keys[2], (C, C), jnp.float32)
    b_ap = jnp.zeros((1, C), jnp.float32)
    g2 = jnp.ones((1, C), jnp.float32)
    b2 = jnp.zeros((1, C), jnp.float32)
    w_fc = 0.02 * jax.random.normal(keys[3], (C, 4 * C), jnp.float32)
    b_fc = jnp.zeros((1, 4 * C), jnp.float32)
    w_mp = 0.02 * jax.random.normal(keys[4], (4 * C, C), jnp.float32)
    b_mp = jnp.zeros((1, C), jnp.float32)

    params = (g1, b1, w_attn, b_attn, w_ap, b_ap, g2, b2, w_fc, b_fc, w_mp, b_mp)

    out, present = block_forward(x, params, n_head=n_head, eps=1e-5, scale=False)
    out = jax.block_until_ready(out)
    present = jax.block_until_ready(present)

    # verify against pure-JAX f32 reference (kernel matmuls / KV cache run in bf16 -> loosened tol)
    ref_out, ref_present = block_reference(x, params, n_head=n_head, eps=1e-5, scale=False)
    assert jnp.allclose(out, ref_out, atol=5e-3, rtol=5e-3), "output mismatch"
    assert jnp.allclose(present, ref_present, atol=5e-3, rtol=5e-3), "present mismatch"

    print("KERNEL_OK")
</pallas_src>

<mosaic_0001>
module attributes {stable_mosaic.version = 11 : i64} {
  func.func @block_kernel(%arg0: i32, %arg1: i32, %arg2: memref<1x8x32xf32, #tpu.memory_space<vmem>>, %arg3: memref<1x32xf32, #tpu.memory_space<vmem>>, %arg4: memref<1x32xf32, #tpu.memory_space<vmem>>, %arg5: memref<32x32xbf16, #tpu.memory_space<vmem>>, %arg6: memref<1x32xf32, #tpu.memory_space<vmem>>, %arg7: memref<32x64xbf16, #tpu.memory_space<vmem>>, %arg8: memref<1x64xf32, #tpu.memory_space<vmem>>, %arg9: memref<32x32xbf16, #tpu.memory_space<vmem>>, %arg10: memref<1x32xf32, #tpu.memory_space<vmem>>, %arg11: memref<1x32xf32, #tpu.memory_space<vmem>>, %arg12: memref<1x32xf32, #tpu.memory_space<vmem>>, %arg13: memref<32x128xbf16, #tpu.memory_space<vmem>>, %arg14: memref<1x128xf32, #tpu.memory_space<vmem>>, %arg15: memref<128x32xbf16, #tpu.memory_space<vmem>>, %arg16: memref<1x32xf32, #tpu.memory_space<vmem>>, %arg17: memref<1x8x32xf32, #tpu.memory_space<vmem>>, %arg18: memref<2x1x8x32xbf16, #tpu.memory_space<vmem>>, %arg19: memref<8x32xbf16, #tpu.memory_space<vmem>>, %arg20: memref<8x32xbf16, #tpu.memory_space<vmem>>) attributes {dimension_semantics = [#tpu.dimension_semantics<parallel>, #tpu.dimension_semantics<arbitrary>], iteration_bounds = array<i64: 2, 1>, scalar_prefetch = 0 : i64, scratch_operands = 2 : i64, tpu.core_type = #tpu.core_type<tc>, window_params = [{transform_indices = @transform_0, window_bounds = array<i64: 1, 8, 32>}, {pipeline_mode = #tpu.pipeline_mode<synchronous>, transform_indices = @transform_1, window_bounds = array<i64: 1, 32>}, {pipeline_mode = #tpu.pipeline_mode<synchronous>, transform_indices = @transform_2, window_bounds = array<i64: 1, 32>}, {pipeline_mode = #tpu.pipeline_mode<synchronous>, transform_indices = @transform_3, window_bounds = array<i64: 32, 32>}, {pipeline_mode = #tpu.pipeline_mode<synchronous>, transform_indices = @transform_4, window_bounds = array<i64: 1, 32>}, {pipeline_mode = #tpu.pipeline_mode<synchronous>, transform_indices = @transform_5, window_bounds = array<i64: 32, 64>}, {pipeline_mode = #tpu.pipeline_mode<synchronous>, transform_indices = @transform_6, window_bounds = array<i64: 1, 64>}, {pipeline_mode = #tpu.pipeline_mode<synchronous>, transform_indices = @transform_7, window_bounds = array<i64: 32, 32>}, {pipeline_mode = #tpu.pipeline_mode<synchronous>, transform_indices = @transform_8, window_bounds = array<i64: 1, 32>}, {pipeline_mode = #tpu.pipeline_mode<synchronous>, transform_indices = @transform_9, window_bounds = array<i64: 1, 32>}, {pipeline_mode = #tpu.pipeline_mode<synchronous>, transform_indices = @transform_10, window_bounds = array<i64: 1, 32>}, {pipeline_mode = #tpu.pipeline_mode<synchronous>, transform_indices = @transform_11, window_bounds = array<i64: 32, 128>}, {pipeline_mode = #tpu.pipeline_mode<synchronous>, transform_indices = @transform_12, window_bounds = array<i64: 1, 128>}, {pipeline_mode = #tpu.pipeline_mode<synchronous>, transform_indices = @transform_13, window_bounds = array<i64: 128, 32>}, {pipeline_mode = #tpu.pipeline_mode<synchronous>, transform_indices = @transform_14, window_bounds = array<i64: 1, 32>}, {transform_indices = @transform_15, window_bounds = array<i64: 1, 8, 32>}, {transform_indices = @transform_16, window_bounds = array<i64: 2, 1, 8, 32>}]} {
    %c8_i32 = arith.constant 8 : i32
    %0 = arith.muli %arg1, %c8_i32 : i32
    %1 = tpu.assume_multiple %0, 8 : i32
    %c0 = arith.constant 0 : index
    %c0_0 = arith.constant 0 : index
    %c0_1 = arith.constant 0 : index
    %2 = vector.load %arg2[%c0, %c0_0, %c0_1] : memref<1x8x32xf32, #tpu.memory_space<vmem>>, vector<1x8x32xf32>
    %3 = vector.shape_cast %2 : vector<1x8x32xf32> to vector<8x32xf32>
    %c0_2 = arith.constant 0 : index
    %c0_3 = arith.constant 0 : index
    %4 = vector.load %arg3[%c0_2, %c0_3] : memref<1x32xf32, #tpu.memory_space<vmem>>, vector<1x32xf32>
    %5 = vector.shape_cast %4 : vector<1x32xf32> to vector<32xf32>
    %c0_4 = arith.constant 0 : index
    %c0_5 = arith.constant 0 : index
    %6 = vector.load %arg4[%c0_4, %c0_5] : memref<1x32xf32, #tpu.memory_space<vmem>>, vector<1x32xf32>
    %7 = vector.shape_cast %6 : vector<1x32xf32> to vector<32xf32>
    %cst = arith.constant dense<0.000000e+00> : vector<8xf32>
    %8 = vector.multi_reduction <add>, %3, %cst [1] : vector<8x32xf32> to vector<8xf32>
    %9 = vector.shape_cast %8 : vector<8xf32> to vector<8x1xf32>
    %cst_6 = arith.constant 3.200000e+01 : f32
    %10 = vector.broadcast %cst_6 : f32 to vector<8x1xf32>
    %11 = arith.divf %9, %10 : vector<8x1xf32>
    %12 = vector.broadcast %11 : vector<8x1xf32> to vector<8x32xf32>
    %13 = arith.subf %3, %12 : vector<8x32xf32>
    %14 = arith.mulf %13, %13 : vector<8x32xf32>
    %cst_7 = arith.constant dense<0.000000e+00> : vector<8xf32>
    %15 = vector.multi_reduction <add>, %14, %cst_7 [1] : vector<8x32xf32> to vector<8xf32>
    %16 = vector.shape_cast %15 : vector<8xf32> to vector<8x1xf32>
    %cst_8 = arith.constant 3.200000e+01 : f32
    %17 = vector.broadcast %cst_8 : f32 to vector<8x1xf32>
    %18 = arith.divf %16, %17 : vector<8x1xf32>
    %19 = vector.broadcast %11 : vector<8x1xf32> to vector<8x32xf32>
    %20 = arith.subf %3, %19 : vector<8x32xf32>
    %cst_9 = arith.constant 9.99999974E-6 : f32
    %21 = vector.broadcast %cst_9 : f32 to vector<8x1xf32>
    %22 = arith.addf %18, %21 : vector<8x1xf32>
    %23 = math.rsqrt %22 : vector<8x1xf32>
    %24 = vector.broadcast %23 : vector<8x1xf32> to vector<8x32xf32>
    %25 = arith.mulf %20, %24 : vector<8x32xf32>
    %26 = vector.shape_cast %5 : vector<32xf32> to vector<1x32xf32>
    %27 = vector.broadcast %26 : vector<1x32xf32> to vector<8x32xf32>
    %28 = arith.mulf %27, %25 : vector<8x32xf32>
    %29 = vector.shape_cast %7 : vector<32xf32> to vector<1x32xf32>
    %30 = vector.broadcast %29 : vector<1x32xf32> to vector<8x32xf32>
    %31 = arith.addf %28, %30 : vector<8x32xf32>
    %32 = arith.truncf %31 : vector<8x32xf32> to vector<8x32xbf16>
    %c0_10 = arith.constant 0 : index
    %c0_11 = arith.constant 0 : index
    %33 = vector.load %arg7[%c0_10, %c0_11] : memref<32x64xbf16, #tpu.memory_space<vmem>>, vector<32x64xbf16>
    %cst_12 = arith.constant dense<0.000000e+00> : vector<8x64xf32>
    %34 = tpu.matmul %32, %33, %cst_12 {dimension_numbers = #tpu.dot_dimension_numbers<[1], [0], [0], [1], [0, 0, 1, 1], [], []>} : vector<8x32xbf16>, vector<32x64xbf16>, vector<8x64xf32> -> vector<8x64xf32>
    %c0_13 = arith.constant 0 : index
    %c0_14 = arith.constant 0 : index
    %35 = vector.load %arg8[%c0_13, %c0_14] : memref<1x64xf32, #tpu.memory_space<vmem>>, vector<1x64xf32>
    %36 = vector.shape_cast %35 : vector<1x64xf32> to vector<64xf32>
    %37 = vector.shape_cast %36 : vector<64xf32> to vector<1x64xf32>
    %38 = vector.broadcast %37 : vector<1x64xf32> to vector<8x64xf32>
    %39 = arith.addf %34, %38 : vector<8x64xf32>
    %40 = vector.extract_strided_slice %39 {offsets = [0, 0], sizes = [8, 32], strides = [1, 1]} : vector<8x64xf32> to vector<8x32xf32>
    %41 = arith.truncf %40 : vector<8x32xf32> to vector<8x32xbf16>
    %42 = vector.extract_strided_slice %39 {offsets = [0, 32], sizes = [8, 32], strides = [1, 1]} : vector<8x64xf32> to vector<8x32xf32>
    %43 = arith.truncf %42 : vector<8x32xf32> to vector<8x32xbf16>
    %44 = arith.index_cast %1 : i32 to index
    %c0_15 = arith.constant 0 : index
    %45 = vector.load %arg19[%44, %c0_15] : memref<8x32xbf16, #tpu.memory_space<vmem>>, vector<8x32xbf16>
    tpu.vector_store %arg19[%44, %c0_15], %41 {strides = array<i32>} : memref<8x32xbf16, #tpu.memory_space<vmem>>, vector<8x32xbf16>,
    %46 = arith.index_cast %1 : i32 to index
    %c0_16 = arith.constant 0 : index
    %47 = vector.load %arg20[%46, %c0_16] : memref<8x32xbf16, #tpu.memory_space<vmem>>, vector<8x32xbf16>
    tpu.vector_store %arg20[%46, %c0_16], %43 {strides = array<i32>} : memref<8x32xbf16, #tpu.memory_space<vmem>>, vector<8x32xbf16>,
    %c0_17 = arith.constant 0 : index
    %c0_18 = arith.constant 0 : index
    %c0_19 = arith.constant 0 : index
    %c0_20 = arith.constant 0 : index
    %48 = vector.load %arg18[%c0_17, %c0_18, %c0_19, %c0_20] : memref<2x1x8x32xbf16, #tpu.memory_space<vmem>>, vector<1x1x8x32xbf16>
    %49 = vector.shape_cast %48 : vector<1x1x8x32xbf16> to vector<8x32xbf16>
    %50 = vector.shape_cast %41 : vector<8x32xbf16> to vector<1x1x8x32xbf16>
    tpu.vector_store %arg18[%c0_17, %c0_18, %c0_19, %c0_20], %50 {strides = array<i32>} : memref<2x1x8x32xbf16, #tpu.memory_space<vmem>>, vector<1x1x8x32xbf16>,
    %c1 = arith.constant 1 : index
    %c0_21 = arith.constant 0 : index
    %c0_22 = arith.constant 0 : index
    %c0_23 = arith.constant 0 : index
    %51 = vector.load %arg18[%c1, %c0_21, %c0_22, %c0_23] : memref<2x1x8x32xbf16, #tpu.memory_space<vmem>>, vector<1x1x8x32xbf16>
    %52 = vector.shape_cast %51 : vector<1x1x8x32xbf16> to vector<8x32xbf16>
    %53 = vector.shape_cast %43 : vector<8x32xbf16> to vector<1x1x8x32xbf16>
    tpu.vector_store %arg18[%c1, %c0_21, %c0_22, %c0_23], %53 {strides = array<i32>} : memref<2x1x8x32xbf16, #tpu.memory_space<vmem>>, vector<1x1x8x32xbf16>,
    %c0_24 = arith.constant 0 : index
    %c0_25 = arith.constant 0 : index
    %54 = vector.load %arg5[%c0_24, %c0_25] : memref<32x32xbf16, #tpu.memory_space<vmem>>, vector<32x32xbf16>
    %cst_26 = arith.constant dense<0.000000e+00> : vector<8x32xf32>
    %55 = tpu.matmul %32, %54, %cst_26 {dimension_numbers = #tpu.dot_dimension_numbers<[1], [0], [0], [1], [0, 0, 1, 1], [], []>} : vector<8x32xbf16>, vector<32x32xbf16>, vector<8x32xf32> -> vector<8x32xf32>
    %c0_27 = arith.constant 0 : index
    %c0_28 = arith.constant 0 : index
    %56 = vector.load %arg6[%c0_27, %c0_28] : memref<1x32xf32, #tpu.memory_space<vmem>>, vector<1x32xf32>
    %57 = vector.shape_cast %56 : vector<1x32xf32> to vector<32xf32>
    %58 = vector.shape_cast %57 : vector<32xf32> to vector<1x32xf32>
    %59 = vector.broadcast %58 : vector<1x32xf32> to vector<8x32xf32>
    %60 = arith.addf %55, %59 : vector<8x32xf32>
    %61 = arith.truncf %60 : vector<8x32xf32> to vector<8x32xbf16>
    %62 = vector.shape_cast %61 : vector<8x32xbf16> to vector<8x4x8xbf16>
    %63 = tpu.iota {dimensions = array<i32: 0>} : vector<8x8xi32>
    %64 = vector.broadcast %1 : i32 to vector<8x8xi32>
    %65 = arith.addi %64, %63 : vector<8x8xi32>
    %66 = tpu.iota {dimensions = array<i32: 1>} : vector<8x8xi32>
    %cst_29 = arith.constant -1.000000e+30 : f32
    %67 = vector.broadcast %cst_29 : f32 to vector<4x8x1xf32>
    %cst_30 = arith.constant 0.000000e+00 : f32
    %68 = vector.broadcast %cst_30 : f32 to vector<4x8x1xf32>
    %cst_31 = arith.constant 0.000000e+00 : f32
    %69 = vector.broadcast %cst_31 : f32 to vector<4x8x8xf32>
    %c1_i32 = arith.constant 1 : i32
    %70 = arith.addi %arg1, %c1_i32 : i32
    %c0_i32 = arith.constant 0 : i32
    %71 = arith.subi %70, %c0_i32 : i32
    %72 = arith.addi %c0_i32, %71 : i32
    %c1_i32_32 = arith.constant 1 : i32
    %73:3 = scf.for %arg21 = %c0_i32 to %72 step %c1_i32_32 iter_args(%arg22 = %67, %arg23 = %68, %arg24 = %69) -> (vector<4x8x1xf32>, vector<4x8x1xf32>, vector<4x8x8xf32>)  : i32 {
      %c8_i32_64 = arith.constant 8 : i32
      %149 = arith.muli %arg21, %c8_i32_64 : i32
      %150 = tpu.assume_multiple %149, 8 : i32
      %151 = arith.index_cast %150 : i32 to index
      %c0_65 = arith.constant 0 : index
      %152 = vector.load %arg19[%151, %c0_65] : memref<8x32xbf16, #tpu.memory_space<vmem>>, vector<8x32xbf16>
      %153 = vector.shape_cast %152 : vector<8x32xbf16> to vector<8x4x8xbf16>
      %154 = arith.index_cast %150 : i32 to index
      %c0_66 = arith.constant 0 : index
      %155 = vector.load %arg20[%154, %c0_66] : memref<8x32xbf16, #tpu.memory_space<vmem>>, vector<8x32xbf16>
      %156 = vector.shape_cast %155 : vector<8x32xbf16> to vector<8x4x8xbf16>
      "tpu.trace_start"() <{level = 10 : i32, message = "tnd,snd->nts"}> : () -> ()
      %cst_67 = arith.constant dense<0.000000e+00> : vector<4x8x8xf32>
      %157 = tpu.matmul %62, %153, %cst_67 {dimension_numbers = #tpu.dot_dimension_numbers<[2], [2], [0], [0], [0, 1, 0, 0, 1, 0], [1], [1]>} : vector<8x4x8xbf16>, vector<8x4x8xbf16>, vector<4x8x8xf32> -> vector<4x8x8xf32>
      "tpu.trace_stop"() : () -> ()
      %158 = vector.broadcast %150 : i32 to vector<8x8xi32>
      %159 = arith.addi %158, %66 : vector<8x8xi32>
      %160 = arith.cmpi sle, %159, %65 : vector<8x8xi32>
      %161 = vector.shape_cast %160 : vector<8x8xi1> to vector<1x8x8xi1>
      %cst_68 = arith.constant -1.000000e+10 : f32
      %162 = vector.shape_cast %161 : vector<1x8x8xi1> to vector<1x8x8xi1>
      %163 = vector.broadcast %162 : vector<1x8x8xi1> to vector<4x8x8xi1>
      %164 = vector.broadcast %cst_68 : f32 to vector<4x8x8xf32>
      %165 = arith.select %163, %157, %164 : vector<4x8x8xi1>, vector<4x8x8xf32>
      %cst_69 = arith.constant dense<0xFF800000> : vector<4x8xf32>
      %166 = vector.multi_reduction <maximumf>, %165, %cst_69 [2] : vector<4x8x8xf32> to vector<4x8xf32>
      %167 = vector.shape_cast %166 : vector<4x8xf32> to vector<4x8x1xf32>
      %168 = arith.maximumf %arg22, %167 : vector<4x8x1xf32>
      %169 = arith.subf %arg22, %168 : vector<4x8x1xf32>
      %170 = math.exp %169 : vector<4x8x1xf32>
      %171 = vector.broadcast %168 : vector<4x8x1xf32> to vector<4x8x8xf32>
      %172 = arith.subf %165, %171 : vector<4x8x8xf32>
      %173 = math.exp %172 : vector<4x8x8xf32>
      %174 = arith.mulf %170, %arg23 : vector<4x8x1xf32>
      %cst_70 = arith.constant dense<0.000000e+00> : vector<4x8xf32>
      %175 = vector.multi_reduction <add>, %173, %cst_70 [2] : vector<4x8x8xf32> to vector<4x8xf32>
      %176 = vector.shape_cast %175 : vector<4x8xf32> to vector<4x8x1xf32>
      %177 = arith.addf %174, %176 : vector<4x8x1xf32>
      %178 = arith.truncf %173 : vector<4x8x8xf32> to vector<4x8x8xbf16>
      "tpu.trace_start"() <{level = 10 : i32, message = "nts,snd->ntd"}> : () -> ()
      %cst_71 = arith.constant dense<0.000000e+00> : vector<4x8x8xf32>
      %179 = tpu.matmul %178, %156, %cst_71 {dimension_numbers = #tpu.dot_dimension_numbers<[2], [0], [1], [2], [0, 0, 0, 1, 1, 2], [0], [1]>} : vector<4x8x8xbf16>, vector<8x4x8xbf16>, vector<4x8x8xf32> -> vector<4x8x8xf32>
      "tpu.trace_stop"() : () -> ()
      %180 = vector.broadcast %170 : vector<4x8x1xf32> to vector<4x8x8xf32>
      %181 = arith.mulf %180, %arg24 : vector<4x8x8xf32>
      %182 = arith.addf %181, %179 : vector<4x8x8xf32>
      scf.yield %168, %177, %182 : vector<4x8x1xf32>, vector<4x8x1xf32>, vector<4x8x8xf32>
    }
    %74 = tpu.reciprocal %73#1 {approx = true} : vector<4x8x1xf32> -> vector<4x8x1xf32>
    %75 = vector.broadcast %74 : vector<4x8x1xf32> to vector<4x8x8xf32>
    %76 = arith.mulf %73#2, %75 : vector<4x8x8xf32>
    %77 = tpu.transpose %76, [1, 0, 2] : vector<4x8x8xf32> -> vector<8x4x8xf32>
    %78 = vector.shape_cast %77 : vector<8x4x8xf32> to vector<8x32xf32>
    %79 = arith.truncf %78 : vector<8x32xf32> to vector<8x32xbf16>
    %c0_33 = arith.constant 0 : index
    %c0_34 = arith.constant 0 : index
    %80 = vector.load %arg9[%c0_33, %c0_34] : memref<32x32xbf16, #tpu.memory_space<vmem>>, vector<32x32xbf16>
    %cst_35 = arith.constant dense<0.000000e+00> : vector<8x32xf32>
    %81 = tpu.matmul %79, %80, %cst_35 {dimension_numbers = #tpu.dot_dimension_numbers<[1], [0], [0], [1], [0, 0, 1, 1], [], []>} : vector<8x32xbf16>, vector<32x32xbf16>, vector<8x32xf32> -> vector<8x32xf32>
    %c0_36 = arith.constant 0 : index
    %c0_37 = arith.constant 0 : index
    %82 = vector.load %arg10[%c0_36, %c0_37] : memref<1x32xf32, #tpu.memory_space<vmem>>, vector<1x32xf32>
    %83 = vector.shape_cast %82 : vector<1x32xf32> to vector<32xf32>
    %84 = vector.shape_cast %83 : vector<32xf32> to vector<1x32xf32>
    %85 = vector.broadcast %84 : vector<1x32xf32> to vector<8x32xf32>
    %86 = arith.addf %81, %85 : vector<8x32xf32>
    %87 = arith.addf %3, %86 : vector<8x32xf32>
    %c0_38 = arith.constant 0 : index
    %c0_39 = arith.constant 0 : index
    %88 = vector.load %arg11[%c0_38, %c0_39] : memref<1x32xf32, #tpu.memory_space<vmem>>, vector<1x32xf32>
    %89 = vector.shape_cast %88 : vector<1x32xf32> to vector<32xf32>
    %c0_40 = arith.constant 0 : index
    %c0_41 = arith.constant 0 : index
    %90 = vector.load %arg12[%c0_40, %c0_41] : memref<1x32xf32, #tpu.memory_space<vmem>>, vector<1x32xf32>
    %91 = vector.shape_cast %90 : vector<1x32xf32> to vector<32xf32>
    %cst_42 = arith.constant dense<0.000000e+00> : vector<8xf32>
    %92 = vector.multi_reduction <add>, %87, %cst_42 [1] : vector<8x32xf32> to vector<8xf32>
    %93 = vector.shape_cast %92 : vector<8xf32> to vector<8x1xf32>
    %cst_43 = arith.constant 3.200000e+01 : f32
    %94 = vector.broadcast %cst_43 : f32 to vector<8x1xf32>
    %95 = arith.divf %93, %94 : vector<8x1xf32>
    %96 = vector.broadcast %95 : vector<8x1xf32> to vector<8x32xf32>
    %97 = arith.subf %87, %96 : vector<8x32xf32>
    %98 = arith.mulf %97, %97 : vector<8x32xf32>
    %cst_44 = arith.constant dense<0.000000e+00> : vector<8xf32>
    %99 = vector.multi_reduction <add>, %98, %cst_44 [1] : vector<8x32xf32> to vector<8xf32>
    %100 = vector.shape_cast %99 : vector<8xf32> to vector<8x1xf32>
    %cst_45 = arith.constant 3.200000e+01 : f32
    %101 = vector.broadcast %cst_45 : f32 to vector<8x1xf32>
    %102 = arith.divf %100, %101 : vector<8x1xf32>
    %103 = vector.broadcast %95 : vector<8x1xf32> to vector<8x32xf32>
    %104 = arith.subf %87, %103 : vector<8x32xf32>
    %cst_46 = arith.constant 9.99999974E-6 : f32
    %105 = vector.broadcast %cst_46 : f32 to vector<8x1xf32>
    %106 = arith.addf %102, %105 : vector<8x1xf32>
    %107 = math.rsqrt %106 : vector<8x1xf32>
    %108 = vector.broadcast %107 : vector<8x1xf32> to vector<8x32xf32>
    %109 = arith.mulf %104, %108 : vector<8x32xf32>
    %110 = vector.shape_cast %89 : vector<32xf32> to vector<1x32xf32>
    %111 = vector.broadcast %110 : vector<1x32xf32> to vector<8x32xf32>
    %112 = arith.mulf %111, %109 : vector<8x32xf32>
    %113 = vector.shape_cast %91 : vector<32xf32> to vector<1x32xf32>
    %114 = vector.broadcast %113 : vector<1x32xf32> to vector<8x32xf32>
    %115 = arith.addf %112, %114 : vector<8x32xf32>
    %116 = arith.truncf %115 : vector<8x32xf32> to vector<8x32xbf16>
    %c0_47 = arith.constant 0 : index
    %c0_48 = arith.constant 0 : index
    %117 = vector.load %arg13[%c0_47, %c0_48] : memref<32x128xbf16, #tpu.memory_space<vmem>>, vector<32x128xbf16>
    %cst_49 = arith.constant dense<0.000000e+00> : vector<8x128xf32>
    %118 = tpu.matmul %116, %117, %cst_49 {dimension_numbers = #tpu.dot_dimension_numbers<[1], [0], [0], [1], [0, 0, 1, 1], [], []>} : vector<8x32xbf16>, vector<32x128xbf16>, vector<8x128xf32> -> vector<8x128xf32>
    %c0_50 = arith.constant 0 : index
    %c0_51 = arith.constant 0 : index
    %119 = vector.load %arg14[%c0_50, %c0_51] : memref<1x128xf32, #tpu.memory_space<vmem>>, vector<1x128xf32>
    %120 = vector.shape_cast %119 : vector<1x128xf32> to vector<128xf32>
    %121 = vector.shape_cast %120 : vector<128xf32> to vector<1x128xf32>
    %122 = vector.broadcast %121 : vector<1x128xf32> to vector<8x128xf32>
    %123 = arith.addf %118, %122 : vector<8x128xf32>
    %cst_52 = arith.constant 5.000000e-01 : f32
    %124 = vector.broadcast %cst_52 : f32 to vector<8x128xf32>
    %125 = arith.mulf %124, %123 : vector<8x128xf32>
    %126 = arith.mulf %123, %123 : vector<8x128xf32>
    %127 = arith.mulf %123, %126 : vector<8x128xf32>
    %cst_53 = arith.constant 4.471500e-02 : f32
    %128 = vector.broadcast %cst_53 : f32 to vector<8x128xf32>
    %129 = arith.mulf %128, %127 : vector<8x128xf32>
    %130 = arith.addf %123, %129 : vector<8x128xf32>
    %cst_54 = arith.constant 0.797884583 : f32
    %131 = vector.broadcast %cst_54 : f32 to vector<8x128xf32>
    %132 = arith.mulf %131, %130 : vector<8x128xf32>
    %133 = math.tanh %132 : vector<8x128xf32>
    %cst_55 = arith.constant 1.000000e+00 : f32
    %134 = vector.broadcast %cst_55 : f32 to vector<8x128xf32>
    %135 = arith.addf %134, %133 : vector<8x128xf32>
    %136 = arith.mulf %125, %135 : vector<8x128xf32>
    %137 = arith.truncf %136 : vector<8x128xf32> to vector<8x128xbf16>
    %c0_56 = arith.constant 0 : index
    %c0_57 = arith.constant 0 : index
    %138 = vector.load %arg15[%c0_56, %c0_57] : memref<128x32xbf16, #tpu.memory_space<vmem>>, vector<128x32xbf16>
    %cst_58 = arith.constant dense<0.000000e+00> : vector<8x32xf32>
    %139 = tpu.matmul %137, %138, %cst_58 {dimension_numbers = #tpu.dot_dimension_numbers<[1], [0], [0], [1], [0, 0, 1, 1], [], []>} : vector<8x128xbf16>, vector<128x32xbf16>, vector<8x32xf32> -> vector<8x32xf32>
    %c0_59 = arith.constant 0 : index
    %c0_60 = arith.constant 0 : index
    %140 = vector.load %arg16[%c0_59, %c0_60] : memref<1x32xf32, #tpu.memory_space<vmem>>, vector<1x32xf32>
    %141 = vector.shape_cast %140 : vector<1x32xf32> to vector<32xf32>
    %142 = vector.shape_cast %141 : vector<32xf32> to vector<1x32xf32>
    %143 = vector.broadcast %142 : vector<1x32xf32> to vector<8x32xf32>
    %144 = arith.addf %139, %143 : vector<8x32xf32>
    %145 = arith.addf %87, %144 : vector<8x32xf32>
    %c0_61 = arith.constant 0 : index
    %c0_62 = arith.constant 0 : index
    %c0_63 = arith.constant 0 : index
    %146 = vector.load %arg17[%c0_61, %c0_62, %c0_63] : memref<1x8x32xf32, #tpu.memory_space<vmem>>, vector<1x8x32xf32>
    %147 = vector.shape_cast %146 : vector<1x8x32xf32> to vector<8x32xf32>
    %148 = vector.shape_cast %145 : vector<8x32xf32> to vector<1x8x32xf32>
    tpu.vector_store %arg17[%c0_61, %c0_62, %c0_63], %148 {strides = array<i32>} : memref<1x8x32xf32, #tpu.memory_space<vmem>>, vector<1x8x32xf32>,
    return
  }
  func.func @transform_0(%arg0: i32, %arg1: i32) -> (i32, i32, i32) {
    %c0_i32 = arith.constant 0 : i32
    %c0_i32_0 = arith.constant 0 : i32
    return %arg0, %arg1, %c0_i32 : i32, i32, i32
  }
  func.func @transform_1(%arg0: i32, %arg1: i32) -> (i32, i32) {
    %c0_i32 = arith.constant 0 : i32
    %c0_i32_0 = arith.constant 0 : i32
    %c0_i32_1 = arith.constant 0 : i32
    return %c0_i32, %c0_i32_0 : i32, i32
  }
  func.func @transform_2(%arg0: i32, %arg1: i32) -> (i32, i32) {
    %c0_i32 = arith.constant 0 : i32
    %c0_i32_0 = arith.constant 0 : i32
    %c0_i32_1 = arith.constant 0 : i32
    return %c0_i32, %c0_i32_0 : i32, i32
  }
  func.func @transform_3(%arg0: i32, %arg1: i32) -> (i32, i32) {
    %c0_i32 = arith.constant 0 : i32
    %c0_i32_0 = arith.constant 0 : i32
    %c0_i32_1 = arith.constant 0 : i32
    return %c0_i32, %c0_i32_0 : i32, i32
  }
  func.func @transform_4(%arg0: i32, %arg1: i32) -> (i32, i32) {
    %c0_i32 = arith.constant 0 : i32
    %c0_i32_0 = arith.constant 0 : i32
    %c0_i32_1 = arith.constant 0 : i32
    return %c0_i32, %c0_i32_0 : i32, i32
  }
  func.func @transform_5(%arg0: i32, %arg1: i32) -> (i32, i32) {
    %c0_i32 = arith.constant 0 : i32
    %c0_i32_0 = arith.constant 0 : i32
    %c0_i32_1 = arith.constant 0 : i32
    return %c0_i32, %c0_i32_0 : i32, i32
  }
  func.func @transform_6(%arg0: i32, %arg1: i32) -> (i32, i32) {
    %c0_i32 = arith.constant 0 : i32
    %c0_i32_0 = arith.constant 0 : i32
    %c0_i32_1 = arith.constant 0 : i32
    return %c0_i32, %c0_i32_0 : i32, i32
  }
  func.func @transform_7(%arg0: i32, %arg1: i32) -> (i32, i32) {
    %c0_i32 = arith.constant 0 : i32
    %c0_i32_0 = arith.constant 0 : i32
    %c0_i32_1 = arith.constant 0 : i32
    return %c0_i32, %c0_i32_0 : i32, i32
  }
  func.func @transform_8(%arg0: i32, %arg1: i32) -> (i32, i32) {
    %c0_i32 = arith.constant 0 : i32
    %c0_i32_0 = arith.constant 0 : i32
    %c0_i32_1 = arith.constant 0 : i32
    return %c0_i32, %c0_i32_0 : i32, i32
  }
  func.func @transform_9(%arg0: i32, %arg1: i32) -> (i32, i32) {
    %c0_i32 = arith.constant 0 : i32
    %c0_i32_0 = arith.constant 0 : i32
    %c0_i32_1 = arith.constant 0 : i32
    return %c0_i32, %c0_i32_0 : i32, i32
  }
  func.func @transform_10(%arg0: i32, %arg1: i32) -> (i32, i32) {
    %c0_i32 = arith.constant 0 : i32
    %c0_i32_0 = arith.constant 0 : i32
    %c0_i32_1 = arith.constant 0 : i32
    return %c0_i32, %c0_i32_0 : i32, i32
  }
  func.func @transform_11(%arg0: i32, %arg1: i32) -> (i32, i32) {
    %c0_i32 = arith.constant 0 : i32
    %c0_i32_0 = arith.constant 0 : i32
    %c0_i32_1 = arith.constant 0 : i32
    return %c0_i32, %c0_i32_0 : i32, i32
  }
  func.func @transform_12(%arg0: i32, %arg1: i32) -> (i32, i32) {
    %c0_i32 = arith.constant 0 : i32
    %c0_i32_0 = arith.constant 0 : i32
    %c0_i32_1 = arith.constant 0 : i32
    return %c0_i32, %c0_i32_0 : i32, i32
  }
  func.func @transform_13(%arg0: i32, %arg1: i32) -> (i32, i32) {
    %c0_i32 = arith.constant 0 : i32
    %c0_i32_0 = arith.constant 0 : i32
    %c0_i32_1 = arith.constant 0 : i32
    return %c0_i32, %c0_i32_0 : i32, i32
  }
  func.func @transform_14(%arg0: i32, %arg1: i32) -> (i32, i32) {
    %c0_i32 = arith.constant 0 : i32
    %c0_i32_0 = arith.constant 0 : i32
    %c0_i32_1 = arith.constant 0 : i32
    return %c0_i32, %c0_i32_0 : i32, i32
  }
  func.func @transform_15(%arg0: i32, %arg1: i32) -> (i32, i32, i32) {
    %c0_i32 = arith.constant 0 : i32
    %c0_i32_0 = arith.constant 0 : i32
    return %arg0, %arg1, %c0_i32 : i32, i32, i32
  }
  func.func @transform_16(%arg0: i32, %arg1: i32) -> (i32, i32, i32, i32) {
    %c0_i32 = arith.constant 0 : i32
    %c0_i32_0 = arith.constant 0 : i32
    %c0_i32_1 = arith.constant 0 : i32
    return %c0_i32, %arg0, %arg1, %c0_i32_0 : i32, i32, i32, i32
  }
}

</mosaic_0001>

<bundles_post_ra>
// kernel: tpu_custom_call.1
= control target key start
LH: loop header
LB: loop body
LE: loop exit
PB: predicated region body
PF: predicated region fallthrough
CT: control target
= control target key end

     0   :  { %s2766_s0 = inlined_call_operand.vmem [shape: f32[2,8,32], index: 0, kind: input, shape index: {}]   ;;  %s2767_s1 = inlined_call_operand.hbm [shape: f32[1,32], index: 1, kind: input, shape index: {}]   ;;  %s2768_s2 = inlined_call_operand.vmem [shape: f32[1,32], index: 2, kind: input, shape index: {}]   ;;  %s2769_s3 = inlined_call_operand.vmem [shape: bf16[32,32], index: 3, kind: input, shape index: {}]   ;;  %s2770_s4 = inlined_call_operand.vmem [shape: f32[1,32], index: 4, kind: input, shape index: {}]   ;;  %s2771_s5 = inlined_call_operand.vmem [shape: bf16[32,64], index: 5, kind: input, shape index: {}]   ;;  %s2772_s6 = inlined_call_operand.vmem [shape: f32[1,64], index: 6, kind: input, shape index: {}]   ;;  %s2773_s7 = inlined_call_operand.vmem [shape: bf16[32,32], index: 7, kind: input, shape index: {}]   ;;  %s2774_s8 = inlined_call_operand.vmem [shape: f32[1,32], index: 8, kind: input, shape index: {}]   ;;  %s2775_s9 = inlined_call_operand.vmem [shape: f32[1,32], index: 9, kind: input, shape index: {}]   ;;  %s2776_s10 = inlined_call_operand.vmem [shape: f32[1,32], index: 10, kind: input, shape index: {}]   ;;  %s2777_s11 = inlined_call_operand.vmem [shape: bf16[32,128], index: 11, kind: input, shape index: {}]   ;;  %s2778_s12 = inlined_call_operand.vmem [shape: f32[1,128], index: 12, kind: input, shape index: {}]   ;;  %s2779_s13 = inlined_call_operand.vmem [shape: bf16[128,32], index: 13, kind: input, shape index: {}]   ;;  %s2780_s14 = inlined_call_operand.vmem [shape: f32[1,32], index: 14, kind: input, shape index: {}]   ;;  %s2781_s15 = inlined_call_operand.hbm [shape: f32[2,8,32], index: 15, kind: output, shape index: {0}]   ;;  %s2782_s16 = inlined_call_operand.hbm [shape: bf16[2,2,8,32], index: 16, kind: output, shape index: {1}]  }
   0x1   :  { %2787 = sst [smem:[#allocation16_spill]] %s2766_s0 }
   0x2   :  { %2788 = sst [smem:[#allocation17_spill]] %s2767_s1 }
   0x3   :  { %2789 = sst [smem:[#allocation18_spill]] %s2768_s2 }
   0x4   :  { %2790 = sst [smem:[#allocation19_spill]] %s2769_s3 }
   0x5   :  { %2791 = sst [smem:[#allocation20_spill]] %s2770_s4 }
   0x6   :  { %2792 = sst [smem:[#allocation21_spill]] %s2771_s5 }
   0x7   :  { %2793 = sst [smem:[#allocation22_spill]] %s2772_s6 }
   0x8   :  { %2794 = sst [smem:[#allocation23_spill]] %s2773_s7 }
   0x9   :  { %2795 = sst [smem:[#allocation24_spill]] %s2774_s8 }
   0xa   :  { %2796 = sst [smem:[#allocation25_spill]] %s2780_s14 }
   0xb   :  { %2797 = sst [smem:[#allocation26_spill]] %s2781_s15 }
   0xc   :  { %22 = vsyncpa [#allocation5], 0 }
   0xd   :  { %23 = vsyncpa [#allocation6], 0 }
   0xe   :  { %25 = vsyncpa [#allocation6 + $0x1], 0 }
   0xf   :  { %26 = vsyncpa [#allocation9], 0 }
  0x10   :  { %28 = vsyncpa [#allocation9 + $0x1], 0  ;;  %s2303_s21 = smov 0   ;;  %s2305_s22 = smov 0  }
  0x11   :  { %s2307_s23 = smov 0   ;;  %s2309_s24 = smov 0  }
  0x12   :  { %s2311_s25 = smov 0   ;;  %s2313_s26 = smov 0  }
  0x13 LB: > { %2798 = sst [smem:[#allocation13_spill]] %s2127_s21  ;;  %s1600_s27 = sadd.s32 4294967295, %s2147_s26   ;;  %s2147_s26 = sphi %s2313_s26, %s34_s26   ;;  %s2143_s25 = sphi %s2311_s25, %s2829_s25   ;;  %s2139_s24 = sphi %s2309_s24, %s2828_s24   ;;  %s2135_s23 = sphi %s2307_s23, %s2832_s23   ;;  %s2131_s22 = sphi %s2305_s22, %s2831_s22   ;;  %s2127_s21 = sphi %s2303_s21, %s2830_s21  }
  0x14   : > { %2799 = sst [smem:[#allocation14_spill]] %s2143_s25  ;;  %s1601_s28 = sadd.s32 4294967294, %s2147_s26  }
  0x15   : > { %s46_s29 = sadd.s32 1, %s2143_s25  ;;  %s377_s30 = sadd.s32 1, %s2135_s23 }
  0x16   : > { %p48_p0 = scmp.ge.s32.totalorder %s46_s29, 2  ;;  %p387_p1 = scmp.ne.s32.totalorder %s2135_s23, %s2131_s22 }
  0x17   : > { %p388_p2 = scmp.eq.s32.totalorder %s1600_s27, 1  ;;  %p393_p3 = scmp.ne.s32.totalorder %s2131_s22, %s2127_s21 }
  0x18   : > { %s2834_s29 = smov (%p48_p0, %s46_s29), 0  ;;  %p394_p5 = scmp.eq.s32.totalorder %s1601_s28, 1 }
  0x19   : > { %2800 = sst [smem:[#allocation15_spill]] %s2834_s29  ;;  %p2343_p4 = por %p388_p2, %p387_p1 }
  0x1a   : > { %s372_s17 = ssub.s32 %s2143_s25, %s2834_s29  ;;  %p1602_p6 = scmp.ge.s32.totalorder %s2147_s26, 1 }
  0x1b   : > { %p375_p7 = scmp.eq.s32.totalorder %s372_s17, 0  ;;  %p2350_p8 = por %p394_p5, %p393_p3 }
  0x1c   : > { %p429_p9 = scmp.lt.s32.totalorder %s2147_s26, 3  ;;  %p1731_p11 = scmp.eq.s32.totalorder %s1600_s27, 0 }
  0x1d   : > { %s2356_s19 = scalar_select %p375_p7, %s2135_s23, %s377_s30  }
  0x1e   : > { %p430_p10 = pnand %p1602_p6, %p429_p9  ;;  %s2803_s1 = sld [smem:[#allocation17_spill]] }
  0x1f   : > { %s2201_s14 = smov [#allocation4]  }
  0x20   : > { %p1720_p12 = pneg %p430_p10  ;;  %s443_s28 = sshll.u32 %s2201_s14, 4  ;;  %s444_s28 = int_to_ptr.vmem [resolvable:$true] %s443_s28 }
  0x21   : > { %505 = sbr.rel (%p430_p10) target bundleno = 2165 (0x875), region = 80 }
  0x22   : > { %p1721_p13 = pnand %p1731_p11, %p1720_p12 }
  0x24   : > { %s441_s15 = sshll.u32 %s2803_s1, 4  ;;  %s442_s15 = int_to_ptr.hbm [resolvable:$true] %s441_s15 }
  0x25   : > { %1723 = dma.hbm_to_vmem [thread:$0]  (!%p1721_p13), %s442_s15, 16, %s444_s28, [#allocation5]  }
  0x26   : > { %2114 = dma.done.wait (%p1731_p11), [#allocation5], 16  }
  0x27   : > { %2116 = vsyncadd (%p1731_p11), [#allocation5], 4294967280  ;;  %p563_p0 = scmp.lt.s32.totalorder %s2139_s24, 1  ;;  %s2804_s25 = sld [smem:[#allocation16_spill]]  ;;  %vm575_vm0 = vcmask 261120   ;;  %v2202_v2 = vmov 32.0   ;;  %v708_v44 = vlaneseq }
  0x28   : > { %1908 = vrcp.f32 %v2202_v2  ;;  %s2805_s5 = sld [smem:[#allocation21_spill]]  ;;  %v1904_v27 = vld [vmem:[#allocation4] ss:$0 sm:$0xff]  ;;  %s2394_s14 = sand.u32 1, %s2131_s22   ;;  %vm655_vm5 = vcmask 257024   ;;  %v2432_v51 = vmov 0.0  }
  0x29   : > { %s564_s30 = scalar_select %p563_p0, %s2139_s24, 1  ;;  %v2417_v46 = vshrl.u32 %v708_v44, 7  ;;  %v2419_v47 = vand.u32 127, %v708_v44  ;;  %v2434_v52 = vmov 0.0   ;;  %v2436_v53 = vmov 0.0  }
  0x2a   : > { %s2806_s3 = sld [smem:[#allocation19_spill]]  ;;  %s1607_s15 = sshll.u32 %s2394_s14, 3  ;;  %v2438_v54 = vmov 0.0   ;;  %v2440_v55 = vmov 0.0   ;;  %v2442_v56 = vmov 0.0   ;;  %v2444_v57 = vmov 0.0  }
  0x2b   : > { %s1609_s17 = sshll.u32 %s564_s30, 3  ;;  %s2807_s2 = sld [smem:[#allocation18_spill]]  ;;  %v2446_v58 = vmov 0.0   ;;  %v2448_v59 = vmov -1e+30  }
  0x2c   : > { %s2808_s6 = sld [smem:[#allocation22_spill]]  ;;  %s2203_s30 = smov 112   ;;  %v2450_v60 = vmov -1e+30   ;;  %v2452_v61 = vmov -1e+30  }
  0x2d   : > { %s569_s21 = scalar_lea.vmem %s2804_s25, %s1609_s17  ;;  %s2809_s4 = sld [smem:[#allocation20_spill]]  ;;  %v2454_v62 = vmov -1e+30  }
  0x2e   : > { %v2366_v0 = vld [vmem:[%s569_s21] sm:$0xff]  ;;  %v1909_v3 = vpop.eup %1908  ;;  %v1697_v14 = vld [vmem:[%s2805_s5 + $0x8] sm:$0xff]  ;;  %s2204_s17 = smov 96   ;;  %s2409_s27 = scalar_lea.vmem [#allocation8], %s1607_s15 }
  0x2f   : > { %v576_v1 = vsel %vm575_vm0, %v2366_v0, 0.0  ;;  %v580_v4 = vmul.f32 32.0, %v1909_v3  ;;  %vm584_vm1 = vweird.f32 %v1909_v3  ;;  %643 = vmatpush.bf16.msra.mxu0 %v1697_v14  ;;  %v1696_v16 = vld [vmem:[%s2805_s5] sm:$0xff]  ;;  %s2205_s21 = smov 104   ;;  %s2206_s25 = smov 120  }
  0x30   : > { %577 = vadd.xlane.f32.xlu0 %v576_v1  ;;  %v1699_v15 = vld [vmem:[%s2806_s3 + $0x8] sm:$0xff]  ;;  %v1698_v17 = vld [vmem:[%s2806_s3] sm:$0xff]  ;;  %s2430_s29 = scalar_lea.vmem [#allocation7], %s1607_s15  ;;  %s2456_s15 = smov 0  }
  0x31   : > { %v581_v5 = vsub.f32 1.0, %v580_v4  ;;  %693 = vmatpush.bf16.msra.mxu1 %v1699_v15  ;;  %v1905_v30 = vld [vmem:[%s2807_s2] ss:$0 sm:$0xff] }
  0x32   : > { %v1906_v34 = vld [vmem:[%s2808_s6] ss:$0 sm:$0xff] }
  0x33   : > { %v582_v6 = vmul.f32 %v1909_v3, %v581_v5  ;;  %644 = vmatpush.bf16.msra.mxu0 %v1696_v16  ;;  %v1907_v35 = vld [vmem:[%s2809_s4] ss:$0 sm:$0xff] }
  0x35   : > { %v583_v7 = vadd.f32 %v1909_v3, %v582_v6  ;;  %694 = vmatpush.bf16.msra.mxu1 %v1698_v17 }
  0x37   : > { %v2370_v8 = vsel %vm584_vm1, %v1909_v3, %v583_v7 }
  0xa3   : > { %v578_v9 = vpop.xlane.xlu0 %577 }
  0xa4   : > { %v586_v10 = vmul.f32 %v2370_v8, %v578_v9 }
  0xa6   : > { %v587_v11 = vsub.f32 %v2366_v0, %v586_v10 }
  0xa8   : > { %v588_v12 = vmul.f32 %v587_v11, %v587_v11 }
  0xaa   : > { %v589_v13 = vsel %vm575_vm0, %v588_v12, 0.0 }
  0xab   : > { %590 = vadd.xlane.f32.xlu0 %v589_v13 }
 0x11e   : > { %v591_v18 = vpop.xlane.xlu0 %590 }
 0x11f   : > { %v592_v19 = vmul.f32 %v591_v18, %v2370_v8 }
 0x121   : > { %v593_v20 = vadd.f32 1e-05, %v592_v19 }
 0x123   : > { %1910 = vrsqrt.f32 %v593_v20  ;;  %vm600_vm3 = vweird.f32 %v593_v20 }
 0x129   : > { %v1911_v21 = vpop.eup %1910 }
 0x12a   : > { %v595_v22 = vmul.f32 %v1911_v21, %v593_v20  ;;  %vm601_vm2 = vweird.f32 %v1911_v21 }
 0x12b   : > { %vm602_vm4 = vmor %vm600_vm3, %vm601_vm2 }
 0x12c   : > { %v596_v23 = vmul.f32 %v1911_v21, %v595_v22 }
 0x12e   : > { %v597_v24 = vmul.f32 0.5, %v596_v23 }
 0x130   : > { %v598_v25 = vsub.f32 1.5, %v597_v24 }
 0x132   : > { %v599_v26 = vmul.f32 %v1911_v21, %v598_v25 }
 0x134   : > { %v603_v28 = vsel %vm602_vm4, %v1911_v21, %v599_v26 }
 0x135   : > { %v604_v29 = vmul.f32 %v603_v28, %v587_v11 }
 0x137   : > { %v608_v31 = vmul.f32 %v1904_v27, %v604_v29 }
 0x139   : > { %v612_v32 = vadd.f32 %v1905_v30, %v608_v31 }
 0x13b   : > { %v613_v33 = vpack.c.bf16 %v612_v32, %v612_v32 }
 0x13d   : > { %1618 = vmatmul.msk.bf16.vlgmr.msra.gmra.mxu0 %vm575_vm0, %v613_v33  ;;  %1628 = vmatmul.msk.bf16.vlgmr.msra.gmra.mxu1 %vm575_vm0, %v613_v33 }
 0x1ba   : > { %v646_v36 = vpop.f32.mrf.mxu0  ;;  %v696_v37 = vpop.f32.mrf.mxu1 }
 0x1bb   : > { %v647_v38 = vadd.f32 %v1906_v34, %v646_v36  ;;  %v697_v39 = vadd.f32 %v1907_v35, %v696_v37 }
 0x1bd   : > { %v650_v40 = vpack.c.bf16 %v647_v38, %v647_v38  ;;  %v2403_v41 = vpack.c.bf16 %v697_v39, %v697_v39 }
 0x1bf   : > { %656 = vst.msk [vmem:[#allocation2] sm:$0xf] %vm655_vm5, %v650_v40  ;;  %704 = vrot.lane.b32.xlu2 %v2403_v41, %s2203_s30  ;;  %658 = vrot.lane.b32.xlu1 %v650_v40, %s2204_s17 }
 0x1c0   : > { %664 = vst.msk [vmem:[%s2409_s27] sm:$0xf] %vm655_vm5, %v650_v40 }
 0x1c2   : > { %v648_v42 = vpop.f32.mrf.mxu0  ;;  %v698_v43 = vpop.f32.mrf.mxu1 }
 0x1c7   : > { %706 = vrot.lane.b32.xlu2 %v2403_v41, %s2205_s21  ;;  %702 = vrot.lane.b32.xlu1 %v2403_v41, %s2206_s25 }
 0x219   : > { %v2415_v45 = vpop.permute.xlu2 %704 }
 0x221   : > { %v2421_v48 = vpop.permute.xlu2 %706 }
 0x231   : > { %v659_v49 = vpop.permute.xlu1 %658 }
 0x232   : > { %663 = vst.msk [vmem:[#allocation3] sm:$0xf] %vm655_vm5, %v659_v49 }
 0x233   : > { %1619 = vst.msk [vmem:[%s2409_s27 + $0x4] sm:$0xf] %vm655_vm5, %v659_v49 }
 0x239   : > { %v2426_v50 = vpop.permute.xlu1 %702 }
 0x23a LB: >> { %s1629_s20 = sshll.u32 %s2199_s15, 3  ;;  %s2207_s21 = smov 120   ;;  %vm827_vm6 = vcmask 1043456   ;;  %vm823_vm7 = vcmask 64512   ;;  %s2199_s15 = sphi %s2456_s15, %s718_s15   ;;  %v2195_v62 = vphi %v2454_v62, %v2822_v62   ;;  %v2191_v61 = vphi %v2452_v61, %v2821_v61   ;;  %v2187_v60 = vphi %v2450_v60, %v2820_v60   ;;  %v2183_v59 = vphi %v2448_v59, %v2819_v59   ;;  %v2179_v58 = vphi %v2446_v58, %v2818_v58   ;;  %v2175_v57 = vphi %v2444_v57, %v2817_v57   ;;  %v2171_v56 = vphi %v2442_v56, %v2816_v56   ;;  %v2167_v55 = vphi %v2440_v55, %v2815_v55   ;;  %v2163_v54 = vphi %v2438_v54, %v2814_v54   ;;  %v2159_v53 = vphi %v2436_v53, %v2813_v53   ;;  %v2155_v52 = vphi %v2434_v52, %v2812_v52   ;;  %v2151_v51 = vphi %v2432_v51, %v2811_v51  }
 0x23b   : >> { %s2500_s28 = sshra.s32 %s1629_s20, 3  ;;  %s2208_s25 = smov 112   ;;  %v901_v13 = vstv %s1629_s20 }
 0x23c   : >> { %s1630_s30 = sshll.u32 %s2500_s28, 2  ;;  %s2209_s1 = smov 104   ;;  %v902_v14 = vadd.s32 %v901_v13, %v2419_v47 }
 0x23d   : >> { %s737_s17 = scalar_lea.vmem [#allocation2], %s1630_s30  ;;  %s750_s20 = scalar_lea.vmem [#allocation3], %s1630_s30 }
 0x23e   : >> { %v738_v63 = vld [vmem:[%s737_s17] sm:$0xf]  ;;  %vm903_vm8 = vcmp.le.s32.totalorder %v902_v14, %v2417_v46  ;;  %s718_s15 = sadd.s32 1, %s2199_s15  }
 0x23f   : >> { %740 = vrot.lane.b32.xlu1 %v738_v63, %s2207_s21  ;;  %743 = vrot.lane.b32.xlu0 %v738_v63, %s2208_s25  ;;  %v751_v23 = vld [vmem:[%s750_s20] sm:$0xf]  ;;  %p2586_p1 = scmp.ge.s32.totalorder %s718_s15, 1 }
 0x240   : >> { %v978_v32 = vsel %vm827_vm6, %v751_v23, 0  ;;  %vm1067_vm9 = vcmask (%p2586_p1), 1047556   ;;  %s2212_s15 = smov (%p2586_p1), 24   ;;  %s2213_s28 = smov (%p2586_p1), 8   ;;  %vm1191_vm10 = vcmask (%p2586_p1), 130048   ;;  %vm1193_vm11 = vcmask (%p2586_p1), 195584  }
 0x241   : > { %s2214_s30 = smov (%p2586_p1), 16   ;;  %s2823_s7 = sld [smem:[#allocation23_spill]] (%p2586_p1) }
 0x242   : > { %s2824_s8 = sld [smem:[#allocation24_spill]] (%p2586_p1)  ;;  %s1693_s2 = sshll.u32 (%p2586_p1), %s2139_s24, 2 }
 0x243   : > { %s1428_s17 = sshll.u32 (%p2586_p1), %s2409_s27, 4  ;;  %s2001_s5 = scalar_lea.hbm (%p2586_p1), %s2782_s16, 16  ;;  %s1429_s17 = int_to_ptr.vmem [resolvable:$true] %s1428_s17 }
 0x247   : >> { %746 = vrot.lane.b32.xlu0 %v738_v63, %s2209_s1 }
 0x2b1   : >> { %v741_v1 = vpop.permute.xlu1 %740  ;;  %v744_v2 = vpop.permute.xlu0 %743 }
 0x2b2   : >> { %1915 = vxpose.binary.xlu2.c.b16.start.end [1/2] (short) (narrow) %v741_v1, %v738_v63, 16 }
 0x2b9   : >> { %v747_v3 = vpop.permute.xlu0 %746 }
 0x2ba   : >> { %1912 = vxpose.binary.xlu1.c.b16.start.end [1/2] (short) (narrow) %v747_v3, %v744_v2, 16 }
 0x353   : >> { %v1916_v4 = vpop.trf.xlu2 }
 0x354   : >> { %v829_v5 = vsel %vm827_vm6, %v1916_v4, 0 }
 0x355   : >> { %838 = vmatpush.bf16.msra.mxu0 %v829_v5 }
 0x358   : >> { %1632 = vmatmul.msk.bf16.vlgmr.msra.gmra.mxu0 %vm823_vm7, %v2403_v41 }
 0x359   : >> { %987 = vmatpush.bf16.msrb.mxu0 %v978_v32 }
 0x35b   : >> { %v1917_v6 = vpop.trf.xlu2 }
 0x35c   : >> { %v848_v7 = vsel %vm827_vm6, %v1917_v6, 0 }
 0x35d   : >> { %857 = vmatpush.bf16.msra.mxu1 %v848_v7 }
 0x360   : >> { %1633 = vmatmul.msk.bf16.vlgmr.msra.gmra.mxu1 %vm823_vm7, %v2426_v50 }
 0x366   : >> { %v1913_v9 = vpop.trf.xlu1 }
 0x367   : >> { %v867_v10 = vsel %vm827_vm6, %v1913_v9, 0 }
 0x368   : >> { %876 = vmatpush.bf16.msra.mxu2 %v867_v10 }
 0x36b   : >> { %1634 = vmatmul.msk.bf16.vlgmr.msra.gmra.mxu2 %vm823_vm7, %v2415_v45  ;;  %v2211_v45 = vmov (%p2586_p1), 1934713408  }
 0x36c   : > { %v1096_v46 = vunpack.c.l.s4 (%p2586_p1), %v2211_v45 }
 0x36e   : >> { %v1914_v11 = vpop.trf.xlu1 }
 0x36f   : >> { %v886_v12 = vsel %vm827_vm6, %v1914_v11, 0 }
 0x370   : >> { %895 = vmatpush.bf16.msra.mxu3 %v886_v12 }
 0x373   : >> { %1635 = vmatmul.msk.bf16.vlgmr.msra.gmra.mxu3 %vm823_vm7, %v2421_v48 }
 0x3d5   : >> { %v840_v15 = vpop.f32.mrf.mxu0 }
 0x3d6   : >> { %v906_v16 = vsel %vm903_vm8, %v840_v15, -1e+10 }
 0x3d7   : >> { %v910_v17 = vsel %vm823_vm7, %v906_v16, -inf }
 0x3d8   : >> { %911 = vmax.xlane.f32.xlu0 %v910_v17 }
 0x3dd   : >> { %v842_v18 = vpop.f32.mrf.mxu0  ;;  %v859_v19 = vpop.f32.mrf.mxu1 }
 0x3de   : >> { %v907_v20 = vsel %vm903_vm8, %v859_v19, -1e+10 }
 0x3df   : >> { %v913_v21 = vsel %vm823_vm7, %v907_v20, -inf }
 0x3e0   : >> { %914 = vmax.xlane.f32.xlu1 %v913_v21 }
 0x3e5   : >> { %v861_v22 = vpop.f32.mrf.mxu1 }
 0x3ec   : >> { %755 = vrot.lane.b32.xlu0 %v751_v23, %s2208_s25  ;;  %s1401_s25 = scalar_lea.sflag (%p2586_p1), [#allocation9], %s2394_s14 }
 0x3ee   : >> { %v878_v24 = vpop.f32.mrf.mxu2 }
 0x3ef   : >> { %v908_v25 = vsel %vm903_vm8, %v878_v24, -1e+10 }
 0x3f0   : >> { %v916_v26 = vsel %vm823_vm7, %v908_v25, -inf }
 0x3f1   : >> { %917 = vmax.xlane.f32.xlu2 %v916_v26 }
 0x3f4   : >> { %757 = vrot.lane.b32.xlu0 %v751_v23, %s2209_s1 }
 0x3f6   : >> { %v897_v27 = vpop.f32.mrf.mxu3  ;;  %v880_v28 = vpop.f32.mrf.mxu2 }
 0x3f7   : >> { %v909_v30 = vsel %vm903_vm8, %v897_v27, -1e+10 }
 0x3f8   : >> { %v919_v31 = vsel %vm823_vm7, %v909_v30, -inf }
 0x3fe   : >> { %v899_v29 = vpop.f32.mrf.mxu3 }
 0x41e   : >> { %920 = vmax.xlane.f32.xlu0 %v919_v31 }
 0x432   : >> { %753 = vrot.lane.b32.xlu0 %v751_v23, %s2207_s21 }
 0x44b   : >> { %v912_v33 = vpop.xlane.xlu0 %911 }
 0x44c   : >> { %v2543_v34 = vmax.f32 %v2195_v62, %v912_v33  }
 0x44e   : >> { %v926_v35 = vsub.f32 %v2195_v62, %v2543_v34  ;;  %v938_v36 = vsub.f32 %v906_v16, %v2543_v34 }
 0x450   : >> { %v942_v37 = vmul.f32 1.442695, %v938_v36  ;;  %v930_v24 = vmul.f32 1.442695, %v926_v35 }
 0x452   : >> { %1918 = vpow2.f32 %v942_v37 }
 0x453   : >> { %v915_v38 = vpop.xlane.xlu1 %914 }
 0x454   : >> { %v2549_v39 = vmax.f32 %v2191_v61, %v915_v38  }
 0x456   : >> { %v927_v40 = vsub.f32 %v2191_v61, %v2549_v39  ;;  %v939_v42 = vsub.f32 %v907_v20, %v2549_v39 }
 0x458   : >> { %v944_v43 = vmul.f32 1.442695, %v939_v42  ;;  %v1919_v44 = vpop.eup %1918 }
 0x459   : >> { %v970_v49 = vpack.c.bf16 %v1919_v44, %v1919_v44  ;;  %v954_v63 = vsel %vm823_vm7, %v1919_v44, 0.0 }
 0x45a   : >> { %1920 = vpow2.f32 %v944_v43 }
 0x45b   : >> { %1636 = vmatmul.msk.bf16.vlgmr.msrb.gmra.mxu0 %vm823_vm7, %v970_v49 }
 0x45c   : >> { %955 = vadd.xlane.f32.xlu0 %v954_v63 }
 0x45e   : >> { %v756_v62 = vpop.permute.xlu0 %755 }
 0x45f   : >> { %v1016_v1 = vsel %vm827_vm6, %v756_v62, 0 }
 0x460   : >> { %1025 = vmatpush.bf16.msrb.mxu2 %v1016_v1  ;;  %v1921_v2 = vpop.eup %1920 }
 0x461   : >> { %v957_v3 = vsel %vm823_vm7, %v1921_v2, 0.0  ;;  %v971_v23 = vpack.c.bf16 %v1921_v2, %v1921_v2 }
 0x462   : >> { %958 = vadd.xlane.f32.xlu2 %v957_v3 }
 0x464   : >> { %v918_v61 = vpop.xlane.xlu2 %917 }
 0x465   : >> { %v2559_v4 = vmax.f32 %v2187_v60, %v918_v61  }
 0x466   : >> { %v758_v5 = vpop.permute.xlu0 %757 }
 0x467   : >> { %v928_v6 = vsub.f32 %v2187_v60, %v2559_v4  ;;  %v940_v7 = vsub.f32 %v908_v25, %v2559_v4  ;;  %v1035_v9 = vsel %vm827_vm6, %v758_v5, 0 }
 0x468   : >> { %1044 = vmatpush.bf16.msrb.mxu3 %v1035_v9 }
 0x469   : >> { %v946_v10 = vmul.f32 1.442695, %v940_v7  ;;  %v934_v36 = vmul.f32 1.442695, %v928_v6 }
 0x46b   : >> { %1922 = vpow2.f32 %v946_v10 }
 0x471   : >> { %v1923_v11 = vpop.eup %1922 }
 0x472   : >> { %v960_v12 = vsel %vm823_vm7, %v1923_v11, 0.0  ;;  %v972_v13 = vpack.c.bf16 %v1923_v11, %v1923_v11 }
 0x473   : >> { %961 = vadd.xlane.f32.xlu2 %v960_v12  ;;  %v2210_v12 = vmov (%p2586_p1), 1983009808  }
 0x474   : >> { %1638 = vmatmul.msk.bf16.vlgmr.msrb.gmra.mxu2 %vm823_vm7, %v972_v13  ;;  %v1072_v13 = vunpack.c.l.s4 (%p2586_p1), %v2210_v12 }
 0x491   : >> { %v921_v14 = vpop.xlane.xlu0 %920 }
 0x492   : >> { %v2568_v15 = vmax.f32 %v2183_v59, %v921_v14  }
 0x494   : >> { %v929_v60 = vsub.f32 %v2183_v59, %v2568_v15  ;;  %v941_v16 = vsub.f32 %v909_v30, %v2568_v15  ;;  %v932_v59 = vmul.f32 1.442695, %v927_v40 }
 0x496   : >> { %v948_v17 = vmul.f32 1.442695, %v941_v16 }
 0x498   : >> { %1924 = vpow2.f32 %v948_v17 }
 0x499   : >> { %1926 = vpow2.f32 %v930_v24  ;;  %v1097_v24 = vunpack.c.0.s8 (%p2586_p1), %v1096_v46 }
 0x49a   : >> { %1928 = vpow2.f32 %v932_v59  ;;  %v2819_v59 = vmov %v2568_v15 }
 0x49b   : >> { %1930 = vpow2.f32 %v934_v36 }
 0x49e   : >> { %v1925_v18 = vpop.eup %1924 }
 0x49f   : >> { %v963_v19 = vsel %vm823_vm7, %v1925_v18, 0.0  ;;  %v973_v20 = vpack.c.bf16 %v1925_v18, %v1925_v18  ;;  %v1927_v25 = vpop.eup %1926 }
 0x4a0   : >> { %964 = vadd.xlane.f32.xlu2 %v963_v19  ;;  %v950_v26 = vmul.f32 %v2179_v58, %v1927_v25  ;;  %v1929_v29 = vpop.eup %1928  ;;  %v1050_v33 = vmul.f32 %v2163_v54, %v1927_v25 }
 0x4a1   : >> { %1639 = vmatmul.msk.bf16.vlgmr.msrb.gmra.mxu3 %vm823_vm7, %v973_v20  ;;  %v951_v30 = vmul.f32 %v2175_v57, %v1929_v29  ;;  %v1931_v42 = vpop.eup %1930  ;;  %v936_v57 = vmul.f32 1.442695, %v929_v60  ;;  %v1051_v6 = vmul.f32 %v2159_v53, %v1929_v29  ;;  %v2820_v60 = vmov %v2559_v4 }
 0x4a2   : >> { %v952_v40 = vmul.f32 %v2171_v56, %v1931_v42  ;;  %v1052_v58 = vmul.f32 %v2155_v52, %v1931_v42 }
 0x4a3   : >> { %1932 = vpow2.f32 %v936_v57 }
 0x4a4   : >> { %v754_v21 = vpop.permute.xlu0 %753 }
 0x4a5   : >> { %v997_v22 = vsel %vm827_vm6, %v754_v21, 0 }
 0x4a6   : >> { %1006 = vmatpush.bf16.msrb.mxu1 %v997_v22 }
 0x4a9   : >> { %1637 = vmatmul.msk.bf16.vlgmr.msrb.gmra.mxu1 %vm823_vm7, %v971_v23  ;;  %v1933_v1 = vpop.eup %1932 }
 0x4aa   : >> { %v953_v54 = vmul.f32 %v2167_v55, %v1933_v1  ;;  %v1053_v61 = vmul.f32 %v2151_v51, %v1933_v1 }
 0x4cf   : >> { %v956_v27 = vpop.xlane.xlu0 %955 }
 0x4d0   : >> { %v966_v28 = vadd.f32 %v956_v27, %v950_v26  }
 0x4d2   : > { %1939 = vrcp.f32 (%p2586_p1), %v966_v28 }
 0x4d5   : >> { %v959_v31 = vpop.xlane.xlu2 %958 }
 0x4d6   : >> { %v967_v32 = vadd.f32 %v959_v31, %v951_v30  }
 0x4d8   : >> { %v989_v37 = vpop.f32.mrf.mxu0  ;;  %v2817_v57 = vmov %v967_v32  ;;  %1941 = vrcp.f32 (%p2586_p1), %v967_v32  ;;  %v1940_v11 = vpop.eup (%p2586_p1), %1939 }
 0x4d9   : >> { %v1054_v38 = vadd.f32 %v1050_v33, %v989_v37  }
 0x4db   : > { %v1062_v15 = vmul.f32 (%p2586_p1), %v1940_v11, %v1054_v38 }
 0x4dd   : > { %v1069_v18 = vrot.slane (%p2586_p1), %v1062_v15, 4 }
 0x4de   : > { %v1942_v14 = vpop.eup (%p2586_p1), %1941 }
 0x4e0   : >> { %v991_v35 = vpop.f32.mrf.mxu0 }
 0x4e6   : >> { %v962_v43 = vpop.xlane.xlu2 %961 }
 0x4e7   : >> { %v968_v44 = vadd.f32 %v962_v43, %v952_v40  }
 0x4e9   : > { %1943 = vrcp.f32 (%p2586_p1), %v968_v44 }
 0x4ef   : > { %v1944_v4 = vpop.eup (%p2586_p1), %1943 }
 0x4f7   : >> { %v1027_v49 = vpop.f32.mrf.mxu2 }
 0x4f8   : >> { %v1056_v63 = vadd.f32 %v1052_v58, %v1027_v49   ;;  %v2818_v58 = vmov %v966_v28 }
 0x4ff   : >> { %v1029_v62 = vpop.f32.mrf.mxu2 }
 0x500   : >> { %v2822_v62 = vmov %v2543_v34  ;;  %v1073_v34 = vunpack.c.0.s8 (%p2586_p1), %v1072_v13 }
 0x513   : >> { %v965_v2 = vpop.xlane.xlu2 %964 }
 0x514   : >> { %v969_v3 = vadd.f32 %v965_v2, %v953_v54   ;;  %v2814_v54 = vmov %v1054_v38 }
 0x516   : >> { %v2815_v55 = vmov %v969_v3  ;;  %1945 = vrcp.f32 (%p2586_p1), %v969_v3 }
 0x51c   : > { %v1946_v17 = vpop.eup (%p2586_p1), %1945 }
 0x524   : >> { %v1046_v5 = vpop.f32.mrf.mxu3 }
 0x525   : >> { %v1057_v7 = vadd.f32 %v1053_v61, %v1046_v5   ;;  %v2821_v61 = vmov %v2549_v39  ;;  %v1064_v39 = vmul.f32 (%p2586_p1), %v1944_v4, %v1056_v63 }
 0x526   : >> { %v1008_v56 = vpop.f32.mrf.mxu1 }
 0x527   : >> { %v1055_v9 = vadd.f32 %v1051_v6, %v1008_v56   ;;  %v2811_v51 = vmov %v1057_v7  ;;  %v2816_v56 = vmov %v968_v44  ;;  %v1065_v19 = vmul.f32 (%p2586_p1), %v1946_v17, %v1057_v7 }
 0x528   : > { %v1066_v21 = vrot.slane (%p2586_p1), %v1064_v39, 4  ;;  %v1070_v41 = vsel (%p2586_p1), %vm1067_vm9, %v1064_v39, %v1069_v18 }
 0x529   : >> { %v2813_v53 = vmov %v1055_v9  ;;  %v1063_v16 = vmul.f32 (%p2586_p1), %v1942_v14, %v1055_v9  ;;  %v1078_v47 = vperm.slane (%p2586_p1), %v1070_v41, %v1073_v34  ;;  %v1079_v48 = vrot.slane (%p2586_p1), %v1065_v19, 4 }
 0x52a   : > { %v1068_v51 = vsel (%p2586_p1), %vm1067_vm9, %v1066_v21, %v1062_v15  ;;  %v1700_v21 = vld [vmem:[%s2823_s7] sm:$0xff] (%p2586_p1) }
 0x52b   : > { %720 = sbr.rel (!%p2586_p1) target bundleno = 570 (0x23a), region = 149  ;;  %v1081_v20 = vrot.slane (%p2586_p1), %v1063_v16, 4  ;;  %v1074_v55 = vperm.slane (%p2586_p1), %v1068_v51, %v1073_v34  ;;  %v1080_v60 = vsel (%p2586_p1), %vm1067_vm9, %v1079_v48, %v1063_v16  ;;  %v1105_v22 = vrot.slane (%p2586_p1), %v1078_v47, 4 }
 0x52c   : >> { %v1048_v10 = vpop.f32.mrf.mxu3  ;;  %v1086_v23 = vperm.slane (%p2586_p1), %v1080_v60, %v1073_v34  ;;  %v1934_v60 = vld [vmem:[%s2824_s8] ss:$0 sm:$0xff] (%p2586_p1) }
 0x52d   : > { %v1082_v50 = vsel (%p2586_p1), %vm1067_vm9, %v1065_v19, %v1081_v20  ;;  %v1093_v25 = vrot.slane (%p2586_p1), %v1074_v55, 4  ;;  %v1701_v20 = vld [vmem:[%s2823_s7 + $0x8] sm:$0xff] (%p2586_p1) }
 0x52e   : >> { %v1010_v52 = vpop.f32.mrf.mxu1  ;;  %v1090_v53 = vperm.slane (%p2586_p1), %v1082_v50, %v1073_v34  ;;  %v1091_v27 = vrot.slane (%p2586_p1), %v1086_v23, 4  ;;  %1225 = vmatpush.bf16.msra.mxu0 (%p2586_p1), %v1701_v20 }
 0x52f   : >> { %v2812_v52 = vmov %v1056_v63  ;;  %v1094_v30 = vsel (%p2586_p1), %vm1067_vm9, %v1086_v23, %v1093_v25 }
 0x530   : > { %v1103_v59 = vrot.slane %v1090_v53, 4  ;;  %v1106_v26 = vsel %vm1067_vm9, %v1090_v53, %v1105_v22  ;;  %v1092_v32 = vsel %vm1067_vm9, %v1091_v27, %v1074_v55  ;;  %v1102_v33 = vperm.slane %v1094_v30, %v1097_v24 }
 0x531   : > { %v1114_v29 = vperm.slane %v1106_v26, %v1097_v24  ;;  %v1098_v37 = vperm.slane %v1092_v32, %v1097_v24  ;;  %v1711_v32 = vld [vmem:[%s2779_s13 + $0x38] sm:$0xff] }
 0x532   : > { %v1104_v28 = vsel %vm1067_vm9, %v1103_v59, %v1078_v47  ;;  %v1117_v35 = vrot.slane %v1102_v33, 4  ;;  %1226 = vmatpush.bf16.msra.mxu0 %v1700_v21  ;;  %1380 = vmatpush.bf16.msra.mxu2 %v1711_v32 }
 0x533   : > { %v1110_v31 = vperm.slane %v1104_v28, %v1097_v24  ;;  %v1121_v36 = vrot.slane %v1114_v29, 4  ;;  %v1115_v43 = vrot.slane %v1098_v37, 4 }
 0x534   : > { %v1118_v49 = vsel %vm1067_vm9, 0.0, %v1117_v35  ;;  %v1123_v63 = vsel %vm1067_vm9, %v1117_v35, %v1098_v37  ;;  %v1710_v37 = vld [vmem:[%s2779_s13 + $0x30] sm:$0xff] }
 0x535   : > { %v1119_v38 = vrot.slane %v1110_v31, 4  ;;  %v1122_v42 = vsel %vm1067_vm9, 0.0, %v1121_v36  ;;  %v1134_v40 = vsel %vm1067_vm9, %v1121_v36, %v1110_v31  ;;  %v1116_v57 = vsel %vm1067_vm9, 0.0, %v1115_v43  ;;  %v1703_v31 = vld [vmem:[%s2777_s11 + $0x8] sm:$0xff] }
 0x536   : > { %v1139_v58 = vrot.slane %v1122_v42, 4  ;;  %v1138_v62 = vperm.slane %v1134_v40, %v1073_v34  ;;  %v1127_v1 = vperm.slane %v1123_v63, %v1073_v34  ;;  %v1128_v54 = vrot.slane %v1118_v49, 4  ;;  %1295 = vmatpush.bf16.msra.mxu1 %v1703_v31  ;;  %1381 = vmatpush.bf16.msra.mxu2 %v1710_v37 }
 0x537   : > { %v1120_v44 = vsel %vm1067_vm9, 0.0, %v1119_v38 }
 0x538   : > { %v1140_v2 = vsel %vm1067_vm9, %v1139_v58, %v1120_v44  ;;  %v1159_v61 = vrot.slane %v1138_v62, 4  ;;  %v1129_v5 = vsel %vm1067_vm9, %v1128_v54, %v1116_v57  ;;  %v1147_v6 = vrot.slane %v1127_v1, 4 }
 0x539   : > { %v1144_v3 = vperm.slane %v1140_v2, %v1073_v34  ;;  %v1133_v7 = vperm.slane %v1129_v5, %v1073_v34  ;;  %v1709_v2 = vld [vmem:[%s2779_s13 + $0x28] sm:$0xff]  ;;  %v1706_v5 = vld [vmem:[%s2779_s13 + $0x10] sm:$0xff] }
 0x53a   : > { %1382 = vmatpush.bf16.msra.mxu2 %v1709_v2 }
 0x53b   : > { %v1157_v56 = vrot.slane %v1144_v3, 4  ;;  %v1145_v9 = vrot.slane %v1133_v7, 4  ;;  %v1148_v52 = vsel %vm1067_vm9, %v1133_v7, %v1147_v6  ;;  %v1160_v11 = vsel %vm1067_vm9, %v1144_v3, %v1159_v61  ;;  %v1708_v3 = vld [vmem:[%s2779_s13 + $0x20] sm:$0xff]  ;;  %v1707_v61 = vld [vmem:[%s2779_s13 + $0x18] sm:$0xff]  ;;  %v1705_v6 = vld [vmem:[%s2779_s13 + $0x8] sm:$0xff] }
 0x53c   : > { %v1156_v12 = vperm.slane %v1148_v52, %v1097_v24  ;;  %v1168_v4 = vperm.slane %v1160_v11, %v1097_v24  ;;  %v1704_v7 = vld [vmem:[%s2779_s13] sm:$0xff] }
 0x53d   : > { %v1158_v10 = vsel %vm1067_vm9, %v1157_v56, %v1138_v62  ;;  %v1146_v13 = vsel %vm1067_vm9, %v1145_v9, %v1127_v1  ;;  %v1936_v62 = vld [vmem:[%s2776_s10] ss:$0 sm:$0xff] }
 0x53e   : > { %v1152_v14 = vperm.slane %v1146_v13, %v1097_v24  ;;  %v1164_v15 = vperm.slane %v1158_v10, %v1097_v24  ;;  %v1175_v16 = vrot.slane %v1156_v12, 4  ;;  %v1173_v19 = vrot.slane %v1168_v4, 4  ;;  %1383 = vmatpush.bf16.msra.mxu2 %v1708_v3  ;;  %v1937_v56 = vld [vmem:[%s2778_s12] ss:$0 sm:$0xff] }
 0x540   : > { %v1171_v17 = vrot.slane %v1152_v14, 4  ;;  %v1176_v39 = vsel %vm1067_vm9, %v1168_v4, %v1175_v16  ;;  %v1174_v34 = vsel %vm1067_vm9, %v1173_v19, %v1156_v12  ;;  %v1169_v45 = vrot.slane %v1164_v15, 4 }
 0x541   : > { %1186 = vrot.lane.b32.xlu1 %v1176_v39, %s2212_s15 }
 0x542   : > { %v1172_v18 = vsel %vm1067_vm9, %v1164_v15, %v1171_v17  ;;  %v1170_v46 = vsel %vm1067_vm9, %v1169_v45, %v1152_v14  ;;  %1384 = vmatpush.bf16.msra.mxu2 %v1707_v61 }
 0x543   : > { %1178 = vrot.lane.b32.xlu0 %v1172_v18, %s2213_s28 }
 0x546   : > { %1385 = vmatpush.bf16.msra.mxu2 %v1706_v5 }
 0x54a   : > { %1386 = vmatpush.bf16.msra.mxu2 %v1705_v6 }
 0x54b   : > { %1182 = vrot.lane.b32.xlu0 %v1174_v34, %s2214_s30  ;;  %s1427_s30 = scalar_lea.hbm %s2782_s16, %s1693_s2 }
 0x54c   : > { %s1430_s21 = sshll.u32 %s1427_s30, 4  ;;  %s1431_s21 = int_to_ptr.hbm [resolvable:$true] %s1430_s21 }
 0x54d   : > { %s1995_s20 = sshra.s32 %s1431_s21, 4  ;;  %s1996_s20 = int_to_ptr.hbm [resolvable:$true] %s1995_s20 }
 0x54e   : > { %1387 = vmatpush.bf16.msra.mxu2 %v1704_v7  ;;  %s1997_s1 = scalar_lea.hbm %s1996_s20, 8  ;;  %p2002_p6 = scmp.lt.s32.totalorder %s1996_s20, %s2782_s16 }
 0x54f   : > { %p1998_p2 = scmp.ne.s32.totalorder %s1996_s20, %s1997_s1  ;;  %p2003_p7 = scmp.lt.s32.totalorder %s2001_s5, %s1997_s1 }
 0x551   : > { %p1999_p3 = pnand %p1998_p2, %p2343_p4  ;;  %p2004_p9 = por %p2003_p7, %p2002_p6 }
 0x553   : > { %p2000_p5 = pneg %p1999_p3 }
 0x555   : > { %p2005_p10 = pnand %p2004_p9, %p2000_p5 }
 0x5b3   : > { %v1187_v47 = vpop.permute.xlu1 %1186 }
 0x5b5   : > { %v1179_v41 = vpop.permute.xlu0 %1178 }
 0x5b6   : > { %v1190_v48 = vsel %vm823_vm7, %v1170_v46, %v1179_v41 }
 0x5bd   : > { %v1183_v50 = vpop.permute.xlu0 %1182 }
 0x5be   : > { %v1192_v51 = vsel %vm1191_vm10, %v1190_v48, %v1183_v50 }
 0x5bf   : > { %v1194_v53 = vsel %vm1193_vm11, %v1192_v51, %v1187_v47 }
 0x5c0   : > { %v1195_v55 = vpack.c.bf16 %v1194_v53, %v1194_v53 }
 0x5c2   : > { %1648 = vmatmul.msk.bf16.vlgmr.msra.gmra.mxu0 %vm575_vm0, %v1195_v55 }
 0x63f   : > { %v1228_v22 = vpop.f32.mrf.mxu0 }
 0x640   : > { %v1229_v23 = vadd.f32 %v1934_v60, %v1228_v22 }
 0x642   : > { %v2658_v24 = vadd.f32 %v1229_v23, %v2366_v0  ;;  %v1702_v0 = vld [vmem:[%s2777_s11] sm:$0xff] }
 0x643   : > { %1296 = vmatpush.bf16.msra.mxu1 %v1702_v0 }
 0x644   : > { %v1235_v59 = vsel %vm575_vm0, %v2658_v24, 0.0 }
 0x645   : > { %1236 = vadd.xlane.f32.xlu1 %v1235_v59 }
 0x647   : > { %v1230_v25 = vpop.f32.mrf.mxu0 }
 0x6b8   : > { %v1237_v26 = vpop.xlane.xlu1 %1236 }
 0x6b9   : > { %v1238_v27 = vmul.f32 %v1237_v26, %v2370_v8 }
 0x6bb   : > { %v1239_v28 = vsub.f32 %v2658_v24, %v1238_v27 }
 0x6bd   : > { %v1240_v29 = vmul.f32 %v1239_v28, %v1239_v28 }
 0x6bf   : > { %v1241_v30 = vsel %vm575_vm0, %v1240_v29, 0.0 }
 0x6c0   : > { %1242 = vadd.xlane.f32.xlu2 %v1241_v30 }
 0x733   : > { %v1243_v33 = vpop.xlane.xlu2 %1242 }
 0x734   : > { %v1244_v36 = vmul.f32 %v1243_v33, %v2370_v8  ;;  %v1935_v8 = vld [vmem:[%s2775_s9] ss:$0 sm:$0xff] }
 0x736   : > { %v1245_v38 = vadd.f32 1e-05, %v1244_v36 }
 0x738   : > { %1947 = vrsqrt.f32 %v1245_v38  ;;  %vm1252_vm13 = vweird.f32 %v1245_v38 }
 0x73e   : > { %v1948_v35 = vpop.eup %1947 }
 0x73f   : > { %v1247_v42 = vmul.f32 %v1948_v35, %v1245_v38  ;;  %vm1253_vm12 = vweird.f32 %v1948_v35 }
 0x740   : > { %vm1254_vm14 = vmor %vm1252_vm13, %vm1253_vm12 }
 0x741   : > { %v1248_v40 = vmul.f32 %v1948_v35, %v1247_v42 }
 0x743   : > { %v1249_v43 = vmul.f32 0.5, %v1248_v40 }
 0x745   : > { %v1250_v44 = vsub.f32 1.5, %v1249_v43 }
 0x747   : > { %v1251_v58 = vmul.f32 %v1948_v35, %v1250_v44 }
 0x749   : > { %v1255_v49 = vsel %vm1254_vm14, %v1948_v35, %v1251_v58 }
 0x74a   : > { %v1256_v63 = vmul.f32 %v1255_v49, %v1239_v28 }
 0x74c   : > { %v1260_v57 = vmul.f32 %v1935_v8, %v1256_v63 }
 0x74e   : > { %v1264_v1 = vadd.f32 %v1936_v62, %v1260_v57 }
 0x750   : > { %v1265_v54 = vpack.c.bf16 %v1264_v1, %v1264_v1 }
 0x752   : > { %1657 = vmatmul.msk.bf16.vlgmr.msra.gmra.mxu1 %vm575_vm0, %v1265_v54 }
 0x7cf   : > { %v1298_v9 = vpop.f32.mrf.mxu1 }
 0x7d0   : > { %v1299_v10 = vadd.f32 %v1937_v56, %v1298_v9 }
 0x7d2   : > { %v1303_v52 = vmul.f32 %v1299_v10, %v1299_v10  ;;  %v1302_v16 = vmul.f32 0.5, %v1299_v10 }
 0x7d4   : > { %v1304_v11 = vmul.f32 %v1303_v52, %v1299_v10 }
 0x7d6   : > { %v1305_v12 = vmul.f32 0.044715, %v1304_v11 }
 0x7d7   : > { %v1300_v13 = vpop.f32.mrf.mxu1 }
 0x7d8   : > { %v1306_v14 = vadd.f32 %v1305_v12, %v1299_v10 }
 0x7da   : > { %v1307_v15 = vmul.f32 0.7978846, %v1306_v14 }
 0x7dc   : > { %1949 = vtanh.f32 %v1307_v15 }
 0x7e2   : > { %v1950_v4 = vpop.eup %1949 }
 0x7e3   : > { %v1309_v17 = vadd.f32 1.0, %v1950_v4 }
 0x7e5   : > { %v1310_v39 = vmul.f32 %v1309_v17, %v1302_v16 }
 0x7e7   : > { %v1311_v18 = vpack.c.bf16 %v1310_v39, %v1310_v39 }
 0x7e9   : > { %1388 = vmatmul.bf16.vlgmr.msra.gmra.mxu2 %v1311_v18 }
 0x7ea   : > { %2008 = shalt.err (!%p2005_p10)
}
 0x7eb   : > { %s2215_s27 = smov 64   ;;  %s2216_s2 = smov 128  }
 0x7ec   : > { %s2217_s3 = smov 4   ;;  %s1692_s4 = sshll.u32 %s2139_s24, 3 }
 0x7ed   : > { %1717 = dma.vmem_to_hbm [thread:$0]  (%p2343_p4), %s1429_s17, 128, %s1431_s21, %s1401_s25, %s2215_s27, %s2216_s2, %s2217_s3  }
 0x7ee   : > { %s2825_s15 = sld [smem:[#allocation25_spill]]  ;;  %s1414_s1 = sshll.u32 %s2430_s29, 4  ;;  %s1415_s1 = int_to_ptr.vmem [resolvable:$true] %s1414_s1 }
 0x7ef   : > { %s2826_s7 = sld [smem:[#allocation26_spill]]  ;;  %s1396_s24 = scalar_lea.sflag [#allocation6], %s2394_s14 }
 0x7f4   : > { %v1938_v19 = vld [vmem:[%s2825_s15] ss:$0 sm:$0xff] }
 0x7f5   : > { %s1412_s20 = scalar_lea.hbm %s2826_s7, %s1692_s4  ;;  %s2029_s2 = scalar_lea.hbm %s2826_s7, 16 }
 0x7f6   : > { %s1416_s8 = sshll.u32 %s1412_s20, 4  ;;  %s1417_s8 = int_to_ptr.hbm [resolvable:$true] %s1416_s8 }
 0x7f7   : > { %s2023_s17 = sshra.s32 %s1417_s8, 4  ;;  %s2024_s17 = int_to_ptr.hbm [resolvable:$true] %s2023_s17 }
 0x7f8   : > { %s2025_s21 = scalar_lea.hbm %s2024_s17, 8  ;;  %p2030_p0 = scmp.lt.s32.totalorder %s2024_s17, %s2826_s7 }
 0x7f9   : > { %p2026_p11 = scmp.ne.s32.totalorder %s2024_s17, %s2025_s21  ;;  %p2031_p1 = scmp.lt.s32.totalorder %s2029_s2, %s2025_s21 }
 0x7fb   : > { %p2027_p12 = pnand %p2026_p11, %p2343_p4  ;;  %p2032_p2 = por %p2031_p1, %p2030_p0 }
 0x7fd   : > { %p2028_p13 = pneg %p2027_p12 }
 0x7ff   : > { %p2033_p3 = pnand %p2032_p2, %p2028_p13 }
 0x86c   : > { %v1389_v34 = vpop.f32.mrf.mxu2 }
 0x86d   : > { %v1390_v20 = vadd.f32 %v1938_v19, %v1389_v34 }
 0x86f   : > { %v1393_v21 = vadd.f32 %v1390_v20, %v2658_v24 }
 0x871   : > { %1394 = vst.msk [vmem:[%s2430_s29] sm:$0xff] %vm575_vm0, %v1393_v21 }
 0x872   : > { %2036 = shalt.err (!%p2033_p3)
}
 0x873   : > { %1716 = dma.vmem_to_hbm [thread:$0]  (%p2343_p4), %s1415_s1, 128, %s1417_s8, %s1396_s24  }
 0x874   : > { %v1391_v41 = vpop.f32.mrf.mxu2 }
 0x875 PF: > { %s2827_s14 = sld [smem:[#allocation13_spill]]  ;;  %p1733_p5 = scmp.ge.s32.totalorder %s2147_s26, 2 }
 0x877   : > { %p1725_p6 = pnand %p1733_p5, %p2350_p8 }
 0x879   : > { %p1726_p7 = pneg %p1725_p6 }
 0x87b   : > { %s1445_s29 = sand.u32 1, %s2827_s14  }
 0x87c   : > { %s1446_s28 = scalar_lea.sflag [#allocation6], %s1445_s29 }
 0x87d   : > { %2118 = dma.done.wait (%p1726_p7), %s1446_s28, 128  }
 0x87e   : > { %2120 = vsyncadd (%p1726_p7), %s1446_s28, 4294967168  ;;  %s1456_s30 = scalar_lea.sflag [#allocation9], %s1445_s29 }
 0x87f   : > { %2122 = dma.done.wait (%p1726_p7), %s1456_s30, 128  }
 0x880   : > { %2124 = vsyncadd (%p1726_p7), %s1456_s30, 4294967168  ;;  %s34_s26 = sadd.s32 1, %s2147_s26   ;;  %s2828_s24 = sld [smem:[#allocation14_spill]] }
 0x881   : > { %p31_p9 = scmp.ge.s32.totalorder %s34_s26, 4   ;;  %s2829_s25 = sld [smem:[#allocation15_spill]] }
 0x882   : > { %s2830_s21 = smov %s2131_s22  ;;  %s2831_s22 = smov %s2135_s23 }
 0x883   : > { %s2832_s23 = smov %s2356_s19  ;;  %33 = sbr.rel (!%p31_p9) target bundleno = 19 (0x13), region = 160 }
 0x888   :  { %1462 = vsyncpa [#allocation5], 1 }
 0x889   :  { %1464 = vsyncpa [#allocation5 + $0x1], 1 }
 0x88a   :  { %1465 = vsyncpa [#allocation6], 1 }
 0x88b   :  { %1467 = vsyncpa [#allocation6 + $0x1], 1 }
 0x88c   :  { %1468 = vsyncpa [#allocation9], 1 }
 0x88d   :  { %1470 = vsyncpa [#allocation9 + $0x1], 1 }

</bundles_post_ra>
